<compile_context>
chip_gen: v6e
topology: v6e:2x2x1
jax: 0.10.0
libtpu: 0.0.40
codegen_flags: <defaults>
</compile_context>

<pallas_src>
import jax
import jax.numpy as jnp
from jax import lax
from jax.experimental import pallas as pl
from jax.experimental.pallas import tpu as pltpu

BN_EPS = 1e-5
VMEM_LIMIT = 48 * 1024 * 1024   # safe on v7x (64 MiB VMEM), generous on v5e/v6e


def _tucker_tile_kernel(head_ref, rela_ref, mu0_ref, inv0_ref,
                        tsel_ref, rsel_ref, w2_ref,
                        y_ref, psum_ref, psumsq_ref):
    """One (TN, D) batch tile of the Tucker bilinear contraction + bn1 partials.

    y[n, j] = sum_{r,i} rela[n, r] * x0[n, i] * W[r, i, j]
            = (z @ W2)[n, j],  z[n, r*D+i] = rela[n, r] * x0[n, i]
    """
    # bn0 (training mode); full-batch mu0 / invstd0 precomputed in the wrapper.
    x0 = (head_ref[...] - mu0_ref[...]) * inv0_ref[...]               # (TN, D) f32

    # Lane expansions via 0/1 selector matmuls on the MXU (exact):
    #   xt[n, r*D + i] = x0[n, i]       rr[n, r*D + i] = rela[n, r]
    xt = jnp.dot(x0.astype(jnp.bfloat16), tsel_ref[...],
                 preferred_element_type=jnp.float32)                  # (TN, D*D) f32
    rr = jnp.dot(rela_ref[...], rsel_ref[...],
                 preferred_element_type=jnp.float32)                  # (TN, D*D) f32

    # Per-row outer product (f32 VPU); bf16 only at the MXU operand boundary.
    z = (xt * rr).astype(jnp.bfloat16)                                # (TN, D*D) bf16

    # Single big MXU matmul with f32 accumulation.
    y = jnp.dot(z, w2_ref[...], preferred_element_type=jnp.float32)   # (TN, D) f32

    y_ref[...] = y
    # Per-tile bn1 partial statistics.  Padded rows contribute exact zeros
    # (zero-padded rela rows => rr = 0 => z = 0 => y = 0).
    psum_ref[...] = jnp.sum(y, axis=0, keepdims=True)
    psumsq_ref[...] = jnp.sum(y * y, axis=0, keepdims=True)


def tucker_forward(head_idx, tail_idx, rela_idx, ent_embed, rel_embed, W):
    """head_idx/tail_idx/rela_idx: int arrays of identical shape."""
    shapes = head_idx.shape
    head = head_idx.reshape(-1)
    tail = tail_idx.reshape(-1)
    rela = rela_idx.reshape(-1)

    # Embedding gathers (glue).
    head_e = jnp.take(ent_embed, head, axis=0)                         # (N, D) f32
    tail_e = jnp.take(ent_embed, tail, axis=0)                         # (N, D) f32
    rela_e = jnp.take(rel_embed, rela, axis=0)                         # (N, D) f32

    N, D = head_e.shape

    # ---- bn0 full-batch statistics (cheap O(N*D) XLA reduce, passed as (1, D)) ----
    mu0 = jnp.mean(head_e, axis=0, keepdims=True)
    var0 = jnp.mean((head_e - mu0) ** 2, axis=0, keepdims=True)
    inv0 = lax.rsqrt(var0 + BN_EPS)

    # ---- batch tiling: big tiles (multiple of 128) amortize per-step overhead ----
    TN = min(1024, -(-N // 128) * 128)
    num_tiles = -(-N // TN)
    n_pad = num_tiles * TN
    pad = n_pad - N

    head_p = jnp.pad(head_e, ((0, pad), (0, 0)))
    # bf16 operands for the MXU (f32 accumulation inside the kernel).
    rela_p = jnp.pad(rela_e.astype(jnp.bfloat16), ((0, pad), (0, 0)))
    w2 = W.reshape(D * D, D).astype(jnp.bfloat16)       # W2[r*D + i, j] = W[r, i, j]

    eye = jnp.eye(D, dtype=jnp.float32)
    t_sel = jnp.tile(eye, (1, D)).astype(jnp.bfloat16)        # T[i, r*D+i'] = d(i,i')
    r_sel = jnp.repeat(eye, D, axis=1).astype(jnp.bfloat16)   # R[r, r'*D+i] = d(r,r')

    cost1 = pl.CostEstimate(
        flops=6 * n_pad * D * D * D + n_pad * D * D,
        transcendentals=0,
        bytes_accessed=(head_p.size * 4 + rela_p.size * 2
                        + 3 * D * D * D * 2 + 2 * D * 4
                        + n_pad * D * 4 + 2 * num_tiles * D * 4))

    # NOTE: at D=32 the resident operands (mu0, inv0, t_sel, r_sel, w2) total
    # ~200 KiB, so their default double-buffering is negligible; for large D,
    # single-buffer them (pl.Buffered(1) pipeline_mode) to halve resident VMEM.
    y, psum, psumsq = pl.pallas_call(
        _tucker_tile_kernel,
        out_shape=(
            jax.ShapeDtypeStruct((n_pad, D), jnp.float32),             # y
            jax.ShapeDtypeStruct((num_tiles, D), jnp.float32),         # per-tile sum(y)
            jax.ShapeDtypeStruct((num_tiles, D), jnp.float32),         # per-tile sum(y*y)
        ),
        grid=(num_tiles,),
        in_specs=[
            pl.BlockSpec((TN, D), lambda i: (i, 0)),                   # head tile (f32)
            pl.BlockSpec((TN, D), lambda i: (i, 0)),                   # rela tile (bf16)
            pl.BlockSpec((1, D), lambda i: (0, 0)),                    # mu0 (resident)
            pl.BlockSpec((1, D), lambda i: (0, 0)),                    # invstd0 (resident)
            pl.BlockSpec((D, D * D), lambda i: (0, 0)),                # T selector (resident)
            pl.BlockSpec((D, D * D), lambda i: (0, 0)),                # R selector (resident)
            pl.BlockSpec((D * D, D), lambda i: (0, 0)),                # W2 (resident)
        ],
        out_specs=(
            pl.BlockSpec((TN, D), lambda i: (i, 0)),
            pl.BlockSpec((1, D), lambda i: (i, 0)),
            pl.BlockSpec((1, D), lambda i: (i, 0)),
        ),
        compiler_params=pltpu.CompilerParams(
            dimension_semantics=("parallel",),       # megacore-shard batch tiles (v7x)
            vmem_limit_bytes=VMEM_LIMIT),
        cost_estimate=cost1,
    )(head_p, rela_p, mu0, inv0, t_sel, r_sel, w2)

    # ---- bn1 statistics + final score (tiny wrapper math; single matvec over y) ----
    s1 = jnp.sum(psum, axis=0)
    s2 = jnp.sum(psumsq, axis=0)
    mu1 = s1 / N
    var1 = jnp.maximum(s2 / N - mu1 * mu1, 0.0)     # clamp single-pass variance
    inv1 = lax.rsqrt(var1 + BN_EPS)
    t_colsum = jnp.sum(tail_e, axis=0)              # sum_m (y1 @ tail^T) = y1 . colsum(tail)
    v = inv1 * t_colsum                             # (D,)
    c = jnp.sum(mu1 * v)                            # scalar offset from the bn1 mean

    scores = jnp.dot(y[:N], v, precision=lax.Precision.HIGHEST) - c
    return scores.reshape(shapes)


def tucker_reference(head_e, tail_e, rela_e, W):
    """Pure-JAX f32 reference mirroring the PyTorch forward (BN train mode, no dropout)."""
    D = head_e.shape[1]
    mu0 = head_e.mean(0)
    var0 = ((head_e - mu0) ** 2).mean(0)
    x0 = (head_e - mu0) / jnp.sqrt(var0 + BN_EPS)
    w_mat = jnp.matmul(rela_e, W.reshape(D, D * D),
                       precision=lax.Precision.HIGHEST).reshape(-1, D, D)
    y = jnp.einsum('ni,nij->nj', x0, w_mat, precision=lax.Precision.HIGHEST)
    mu1 = y.mean(0)
    var1 = ((y - mu1) ** 2).mean(0)
    y1 = (y - mu1) / jnp.sqrt(var1 + BN_EPS)
    return jnp.sum(jnp.matmul(y1, tail_e.T, precision=lax.Precision.HIGHEST), axis=-1)


def tucker_reference_bf16(head_e, tail_e, rela_e, W):
    """Reference applying the same bf16 roundings as the kernel's MXU path."""
    D = head_e.shape[1]
    mu0 = head_e.mean(0)
    var0 = ((head_e - mu0) ** 2).mean(0)
    x0 = (head_e - mu0) / jnp.sqrt(var0 + BN_EPS)
    x0q = x0.astype(jnp.bfloat16).astype(jnp.float32)
    rq = rela_e.astype(jnp.bfloat16).astype(jnp.float32)
    z = (rq[:, :, None] * x0q[:, None, :]).reshape(-1, D * D)          # z[n, r*D+i]
    z = z.astype(jnp.bfloat16).astype(jnp.float32)
    wq = W.astype(jnp.bfloat16).astype(jnp.float32).reshape(D * D, D)
    y = jnp.matmul(z, wq, precision=lax.Precision.HIGHEST)
    mu1 = y.mean(0)
    var1 = ((y - mu1) ** 2).mean(0)
    y1 = (y - mu1) / jnp.sqrt(var1 + BN_EPS)
    return jnp.sum(jnp.matmul(y1, tail_e.T, precision=lax.Precision.HIGHEST), axis=-1)


if __name__ == "__main__":
    n_ent, n_rel, hidden_dim = 50, 10, 32
    batch_shape = (2, 8)    # flattened batch N = 16

    key = jax.random.PRNGKey(0)
    k_ent, k_rel, k_wlo, k_whi, k_h, k_t, k_r = jax.random.split(key, 7)

    # Deterministic parameter init (shapes from the module's __init__).
    xav_e = (6.0 / (n_ent + hidden_dim)) ** 0.5
    xav_r = (6.0 / (n_rel + hidden_dim)) ** 0.5
    ent_embed = jax.random.uniform(k_ent, (n_ent, hidden_dim), jnp.float32, -xav_e, xav_e)
    rel_embed = jax.random.uniform(k_rel, (n_rel, hidden_dim), jnp.float32, -xav_r, xav_r)
    W_low = jax.random.uniform(k_wlo, (hidden_dim,) * 3, jnp.float32, -1.0, 0.0)
    W_high = jax.random.uniform(k_whi, (hidden_dim,) * 3, jnp.float32, 0.0, 1.0)
    W = W_low + W_high
    # self.bias is a parameter of the module but is unused in forward().

    head_idx = jax.random.randint(k_h, batch_shape, 0, n_ent, jnp.int32)
    tail_idx = jax.random.randint(k_t, batch_shape, 0, n_ent, jnp.int32)
    rela_idx = jax.random.randint(k_r, batch_shape, 0, n_rel, jnp.int32)

    fwd = jax.jit(tucker_forward)
    out = jax.block_until_ready(fwd(head_idx, tail_idx, rela_idx, ent_embed, rel_embed, W))
    assert out.shape == batch_shape and out.dtype == jnp.float32

    # Correctness checks.
    head_e = jnp.take(ent_embed, head_idx.reshape(-1), axis=0)
    tail_e = jnp.take(ent_embed, tail_idx.reshape(-1), axis=0)
    rela_e = jnp.take(rel_embed, rela_idx.reshape(-1), axis=0)

    # Tight check vs a reference with matching bf16 roundings on the MXU path.
    ref_q = tucker_reference_bf16(head_e, tail_e, rela_e, W).reshape(batch_shape)
    if not jnp.allclose(out, ref_q, rtol=5e-3, atol=5e-3):
        raise AssertionError("Pallas kernel does not match bf16-matched reference")

    # Loose sanity check vs the pure-f32 PyTorch-equivalent reference (bf16 drift).
    ref_f32 = tucker_reference(head_e, tail_e, rela_e, W).reshape(batch_shape)
    if not jnp.allclose(out, ref_f32, rtol=1e-1, atol=1e-1):
        raise AssertionError("Pallas kernel deviates too far from f32 reference")

    print("KERNEL_OK")
</pallas_src>

<mosaic_0001>
module attributes {stable_mosaic.version = 11 : i64} {
  func.func @_tucker_tile_kernel(%arg0: i32, %arg1: memref<128x32xf32, #tpu.memory_space<vmem>>, %arg2: memref<128x32xbf16, #tpu.memory_space<vmem>>, %arg3: memref<1x32xf32, #tpu.memory_space<vmem>>, %arg4: memref<1x32xf32, #tpu.memory_space<vmem>>, %arg5: memref<32x1024xbf16, #tpu.memory_space<vmem>>, %arg6: memref<32x1024xbf16, #tpu.memory_space<vmem>>, %arg7: memref<1024x32xbf16, #tpu.memory_space<vmem>>, %arg8: memref<128x32xf32, #tpu.memory_space<vmem>>, %arg9: memref<1x32xf32, #tpu.memory_space<vmem>>, %arg10: memref<1x32xf32, #tpu.memory_space<vmem>>) attributes {dimension_semantics = [#tpu.dimension_semantics<parallel>], iteration_bounds = array<i64: 1>, scalar_prefetch = 0 : i64, scratch_operands = 0 : i64, tpu.core_type = #tpu.core_type<tc>, window_params = [{transform_indices = @transform_0, window_bounds = array<i64: 128, 32>}, {transform_indices = @transform_1, window_bounds = array<i64: 128, 32>}, {pipeline_mode = #tpu.pipeline_mode<synchronous>, transform_indices = @transform_2, window_bounds = array<i64: 1, 32>}, {pipeline_mode = #tpu.pipeline_mode<synchronous>, transform_indices = @transform_3, window_bounds = array<i64: 1, 32>}, {pipeline_mode = #tpu.pipeline_mode<synchronous>, transform_indices = @transform_4, window_bounds = array<i64: 32, 1024>}, {pipeline_mode = #tpu.pipeline_mode<synchronous>, transform_indices = @transform_5, window_bounds = array<i64: 32, 1024>}, {pipeline_mode = #tpu.pipeline_mode<synchronous>, transform_indices = @transform_6, window_bounds = array<i64: 1024, 32>}, {transform_indices = @transform_7, window_bounds = array<i64: 128, 32>}, {transform_indices = @transform_8, window_bounds = array<i64: 1, 32>}, {transform_indices = @transform_9, window_bounds = array<i64: 1, 32>}]} {
    %c0 = arith.constant 0 : index
    %c0_0 = arith.constant 0 : index
    %0 = vector.load %arg1[%c0, %c0_0] : memref<128x32xf32, #tpu.memory_space<vmem>>, vector<128x32xf32>
    %c0_1 = arith.constant 0 : index
    %c0_2 = arith.constant 0 : index
    %1 = vector.load %arg3[%c0_1, %c0_2] : memref<1x32xf32, #tpu.memory_space<vmem>>, vector<1x32xf32>
    %2 = vector.broadcast %1 : vector<1x32xf32> to vector<128x32xf32>
    %3 = arith.subf %0, %2 : vector<128x32xf32>
    %c0_3 = arith.constant 0 : index
    %c0_4 = arith.constant 0 : index
    %4 = vector.load %arg4[%c0_3, %c0_4] : memref<1x32xf32, #tpu.memory_space<vmem>>, vector<1x32xf32>
    %5 = vector.broadcast %4 : vector<1x32xf32> to vector<128x32xf32>
    %6 = arith.mulf %3, %5 : vector<128x32xf32>
    %7 = arith.truncf %6 : vector<128x32xf32> to vector<128x32xbf16>
    %c0_5 = arith.constant 0 : index
    %c0_6 = arith.constant 0 : index
    %8 = vector.load %arg5[%c0_5, %c0_6] : memref<32x1024xbf16, #tpu.memory_space<vmem>>, vector<32x1024xbf16>
    %cst = arith.constant dense<0.000000e+00> : vector<128x1024xf32>
    %9 = tpu.matmul %7, %8, %cst {dimension_numbers = #tpu.dot_dimension_numbers<[1], [0], [0], [1], [0, 0, 1, 1], [], []>} : vector<128x32xbf16>, vector<32x1024xbf16>, vector<128x1024xf32> -> vector<128x1024xf32>
    %c0_7 = arith.constant 0 : index
    %c0_8 = arith.constant 0 : index
    %10 = vector.load %arg2[%c0_7, %c0_8] : memref<128x32xbf16, #tpu.memory_space<vmem>>, vector<128x32xbf16>
    %c0_9 = arith.constant 0 : index
    %c0_10 = arith.constant 0 : index
    %11 = vector.load %arg6[%c0_9, %c0_10] : memref<32x1024xbf16, #tpu.memory_space<vmem>>, vector<32x1024xbf16>
    %cst_11 = arith.constant dense<0.000000e+00> : vector<128x1024xf32>
    %12 = tpu.matmul %10, %11, %cst_11 {dimension_numbers = #tpu.dot_dimension_numbers<[1], [0], [0], [1], [0, 0, 1, 1], [], []>} : vector<128x32xbf16>, vector<32x1024xbf16>, vector<128x1024xf32> -> vector<128x1024xf32>
    %13 = arith.mulf %9, %12 : vector<128x1024xf32>
    %14 = arith.truncf %13 : vector<128x1024xf32> to vector<128x1024xbf16>
    %c0_12 = arith.constant 0 : index
    %c0_13 = arith.constant 0 : index
    %15 = vector.load %arg7[%c0_12, %c0_13] : memref<1024x32xbf16, #tpu.memory_space<vmem>>, vector<1024x32xbf16>
    %cst_14 = arith.constant dense<0.000000e+00> : vector<128x32xf32>
    %16 = tpu.matmul %14, %15, %cst_14 {dimension_numbers = #tpu.dot_dimension_numbers<[1], [0], [0], [1], [0, 0, 1, 1], [], []>} : vector<128x1024xbf16>, vector<1024x32xbf16>, vector<128x32xf32> -> vector<128x32xf32>
    %c0_15 = arith.constant 0 : index
    %c0_16 = arith.constant 0 : index
    %17 = vector.load %arg8[%c0_15, %c0_16] : memref<128x32xf32, #tpu.memory_space<vmem>>, vector<128x32xf32>
    tpu.vector_store %arg8[%c0_15, %c0_16], %16 {strides = array<i32>} : memref<128x32xf32, #tpu.memory_space<vmem>>, vector<128x32xf32>,
    %cst_17 = arith.constant dense<0.000000e+00> : vector<32xf32>
    %18 = vector.multi_reduction <add>, %16, %cst_17 [0] : vector<128x32xf32> to vector<32xf32>
    %19 = vector.shape_cast %18 : vector<32xf32> to vector<1x32xf32>
    %c0_18 = arith.constant 0 : index
    %c0_19 = arith.constant 0 : index
    %20 = vector.load %arg9[%c0_18, %c0_19] : memref<1x32xf32, #tpu.memory_space<vmem>>, vector<1x32xf32>
    tpu.vector_store %arg9[%c0_18, %c0_19], %19 {strides = array<i32>} : memref<1x32xf32, #tpu.memory_space<vmem>>, vector<1x32xf32>,
    %21 = arith.mulf %16, %16 : vector<128x32xf32>
    %cst_20 = arith.constant dense<0.000000e+00> : vector<32xf32>
    %22 = vector.multi_reduction <add>, %21, %cst_20 [0] : vector<128x32xf32> to vector<32xf32>
    %23 = vector.shape_cast %22 : vector<32xf32> to vector<1x32xf32>
    %c0_21 = arith.constant 0 : index
    %c0_22 = arith.constant 0 : index
    %24 = vector.load %arg10[%c0_21, %c0_22] : memref<1x32xf32, #tpu.memory_space<vmem>>, vector<1x32xf32>
    tpu.vector_store %arg10[%c0_21, %c0_22], %23 {strides = array<i32>} : memref<1x32xf32, #tpu.memory_space<vmem>>, vector<1x32xf32>,
    return
  }
  func.func @transform_0(%arg0: i32) -> (i32, i32) {
    %c0_i32 = arith.constant 0 : i32
    %c0_i32_0 = arith.constant 0 : i32
    return %arg0, %c0_i32 : i32, i32
  }
  func.func @transform_1(%arg0: i32) -> (i32, i32) {
    %c0_i32 = arith.constant 0 : i32
    %c0_i32_0 = arith.constant 0 : i32
    return %arg0, %c0_i32 : i32, i32
  }
  func.func @transform_2(%arg0: i32) -> (i32, i32) {
    %c0_i32 = arith.constant 0 : i32
    %c0_i32_0 = arith.constant 0 : i32
    %c0_i32_1 = arith.constant 0 : i32
    return %c0_i32, %c0_i32_0 : i32, i32
  }
  func.func @transform_3(%arg0: i32) -> (i32, i32) {
    %c0_i32 = arith.constant 0 : i32
    %c0_i32_0 = arith.constant 0 : i32
    %c0_i32_1 = arith.constant 0 : i32
    return %c0_i32, %c0_i32_0 : i32, i32
  }
  func.func @transform_4(%arg0: i32) -> (i32, i32) {
    %c0_i32 = arith.constant 0 : i32
    %c0_i32_0 = arith.constant 0 : i32
    %c0_i32_1 = arith.constant 0 : i32
    return %c0_i32, %c0_i32_0 : i32, i32
  }
  func.func @transform_5(%arg0: i32) -> (i32, i32) {
    %c0_i32 = arith.constant 0 : i32
    %c0_i32_0 = arith.constant 0 : i32
    %c0_i32_1 = arith.constant 0 : i32
    return %c0_i32, %c0_i32_0 : i32, i32
  }
  func.func @transform_6(%arg0: i32) -> (i32, i32) {
    %c0_i32 = arith.constant 0 : i32
    %c0_i32_0 = arith.constant 0 : i32
    %c0_i32_1 = arith.constant 0 : i32
    return %c0_i32, %c0_i32_0 : i32, i32
  }
  func.func @transform_7(%arg0: i32) -> (i32, i32) {
    %c0_i32 = arith.constant 0 : i32
    %c0_i32_0 = arith.constant 0 : i32
    return %arg0, %c0_i32 : i32, i32
  }
  func.func @transform_8(%arg0: i32) -> (i32, i32) {
    %c0_i32 = arith.constant 0 : i32
    %c0_i32_0 = arith.constant 0 : i32
    return %arg0, %c0_i32 : i32, i32
  }
  func.func @transform_9(%arg0: i32) -> (i32, i32) {
    %c0_i32 = arith.constant 0 : i32
    %c0_i32_0 = arith.constant 0 : i32
    return %arg0, %c0_i32 : i32, i32
  }
}

</mosaic_0001>

<bundles_post_ra>
// kernel: tucker_forward.1
= control target key start
LH: loop header
LB: loop body
LE: loop exit
PB: predicated region body
PF: predicated region fallthrough
CT: control target
= control target key end

     0   :  { %v3013_v3 = vmov 0   ;;  %vm196_vm0 = vcmask 261120   ;;  %vm2446_vm1 = vcmask 253952   ;;  %s4366_s4 = inlined_call_operand.vmem [shape: bf16[32,1024], index: 4, kind: input, shape index: {}]   ;;  %s4367_s0 = inlined_call_operand.vmem [shape: f32[128,32], index: 0, kind: input, shape index: {}]   ;;  %s4368_s2 = inlined_call_operand.vmem [shape: f32[1,32], index: 2, kind: input, shape index: {}]   ;;  %s4369_s3 = inlined_call_operand.vmem [shape: f32[1,32], index: 3, kind: input, shape index: {}]   ;;  %s4370_s5 = inlined_call_operand.vmem [shape: bf16[32,1024], index: 5, kind: input, shape index: {}]   ;;  %s4371_s1 = inlined_call_operand.vmem [shape: bf16[128,32], index: 1, kind: input, shape index: {}]   ;;  %s4372_s6 = inlined_call_operand.vmem [shape: bf16[1024,32], index: 6, kind: input, shape index: {}]   ;;  %s4373_s7 = inlined_call_operand.vmem [shape: f32[128,32], index: 7, kind: output, shape index: {0}]   ;;  %s4374_s8 = inlined_call_operand.vmem [shape: f32[1,32], index: 8, kind: output, shape index: {1}]   ;;  %s4375_s9 = inlined_call_operand.vmem [shape: f32[1,32], index: 9, kind: output, shape index: {2}]  }
   0x1   :  { %v108_v0 = vld [vmem:[%s4366_s4 + $0x40] sm:$0xff]  ;;  %v109_v2 = vld [vmem:[%s4366_s4 + $0x48] sm:$0xff]  ;;  %253 = vmatprep.mubr.bf16.mxu0 %v3013_v3  ;;  %366 = vmatprep.mubr.bf16.mxu1 %v3013_v3  ;;  %v110_v22 = vld [vmem:[%s4366_s4 + $0x50] sm:$0xff] }
   0x2   :  { %v112_v1 = vld [vmem:[%s4366_s4 + $0x60] sm:$0xff]  ;;  %v113_v5 = vld [vmem:[%s4366_s4 + $0x68] sm:$0xff]  ;;  %v114_v23 = vld [vmem:[%s4366_s4 + $0x70] sm:$0xff] }
   0x3   :  { %v2525_v4 = vcombine.high %v108_v0, %v112_v1  ;;  %v2524_v6 = vcombine.low %v108_v0, %v112_v1  ;;  %v100_v7 = vld [vmem:[%s4366_s4] sm:$0xff]  ;;  %v2527_v9 = vcombine.high %v109_v2, %v113_v5  ;;  %v2526_v10 = vcombine.low %v109_v2, %v113_v5  ;;  %v101_v12 = vld [vmem:[%s4366_s4 + $0x8] sm:$0xff]  ;;  %v111_v24 = vld [vmem:[%s4366_s4 + $0x58] sm:$0xff] }
   0x4   :  { %v104_v8 = vld [vmem:[%s4366_s4 + $0x20] sm:$0xff]  ;;  %v105_v13 = vld [vmem:[%s4366_s4 + $0x28] sm:$0xff]  ;;  %v2529_v26 = vcombine.high %v110_v22, %v114_v23  ;;  %v115_v27 = vld [vmem:[%s4366_s4 + $0x78] sm:$0xff]  ;;  %v2528_v36 = vcombine.low %v110_v22, %v114_v23 }
   0x5   :  { %v2517_v11 = vcombine.high %v100_v7, %v104_v8  ;;  %v30_v14 = vld [vmem:[%s4367_s0] sm:$0xff]  ;;  %233 = vmatprep.subr.bf16.mxu0 %v2525_v4  ;;  %v2519_v15 = vcombine.high %v101_v12, %v105_v13  ;;  %v31_v16 = vld [vmem:[%s4367_s0 + $0x8] sm:$0xff]  ;;  %346 = vmatprep.subr.bf16.mxu1 %v2527_v9  ;;  %v2516_v19 = vcombine.low %v100_v7, %v104_v8  ;;  %v32_v28 = vld [vmem:[%s4367_s0 + $0x10] sm:$0xff] }
   0x6   :  { %v3099_v17 = vld [vmem:[%s4368_s2] ss:$0 sm:$0xff]  ;;  %234 = vmatpush1.bf16.msra.mxu0 %v2524_v6  ;;  %347 = vmatpush1.bf16.msra.mxu1 %v2526_v10  ;;  %v2518_v25 = vcombine.low %v101_v12, %v105_v13  ;;  %v33_v29 = vld [vmem:[%s4367_s0 + $0x18] sm:$0xff]  ;;  %v2531_v32 = vcombine.high %v111_v24, %v115_v27  ;;  %v102_v37 = vld [vmem:[%s4366_s4 + $0x10] sm:$0xff]  ;;  %v2530_v39 = vcombine.low %v111_v24, %v115_v27 }
   0x7   :  { %v3104_v18 = vld [vmem:[%s4369_s3] ss:$0 sm:$0xff]  ;;  %v53_v20 = vsub.f32 %v30_v14, %v3099_v17  ;;  %v54_v21 = vsub.f32 %v31_v16, %v3099_v17  ;;  %235 = vmatprep.subr.bf16.mxu0 %v2517_v11  ;;  %348 = vmatprep.subr.bf16.mxu1 %v2519_v15  ;;  %v55_v33 = vsub.f32 %v32_v28, %v3099_v17  ;;  %v106_v38 = vld [vmem:[%s4366_s4 + $0x30] sm:$0xff]  ;;  %v103_v40 = vld [vmem:[%s4366_s4 + $0x18] sm:$0xff] }
   0x8   :  { %v56_v34 = vsub.f32 %v33_v29, %v3099_v17  ;;  %v107_v41 = vld [vmem:[%s4366_s4 + $0x38] sm:$0xff]  ;;  %v2521_v44 = vcombine.high %v102_v37, %v106_v38  ;;  %v34_v45 = vld [vmem:[%s4367_s0 + $0x20] sm:$0xff]  ;;  %v35_v46 = vld [vmem:[%s4367_s0 + $0x28] sm:$0xff]  ;;  %v2520_v47 = vcombine.low %v102_v37, %v106_v38 }
   0x9   :  { %v76_v30 = vmul.f32 %v3104_v18, %v53_v20  ;;  %v77_v31 = vmul.f32 %v3104_v18, %v54_v21  ;;  %v78_v42 = vmul.f32 %v3104_v18, %v55_v33  ;;  %v2522_v48 = vcombine.low %v103_v40, %v107_v41  ;;  %v3160_v50 = vld [vmem:[%s4370_s5 + $0x40] sm:$0xff]  ;;  %v3175_v55 = vld [vmem:[%s4370_s5 + $0x48] sm:$0xff]  ;;  %v36_v58 = vld [vmem:[%s4367_s0 + $0x30] sm:$0xff] }
   0xa   :  { %236 = vmatpush1.bf16.msra.mxu0 %v2516_v19  ;;  %349 = vmatpush1.bf16.msra.mxu1 %v2518_v25  ;;  %v79_v43 = vmul.f32 %v3104_v18, %v56_v34  ;;  %v2523_v49 = vcombine.high %v103_v40, %v107_v41  ;;  %v3165_v51 = vld [vmem:[%s4370_s5 + $0x60] sm:$0xff]  ;;  %v57_v53 = vsub.f32 %v34_v45, %v3099_v17  ;;  %v3180_v56 = vld [vmem:[%s4370_s5 + $0x68] sm:$0xff]  ;;  %v37_v59 = vld [vmem:[%s4367_s0 + $0x38] sm:$0xff] }
   0xb   :  { %v3130_v35 = vpack.c.bf16 %v77_v31, %v76_v30  ;;  %459 = vmatprep.subr.bf16.mxu0 %v2529_v26  ;;  %572 = vmatprep.subr.bf16.mxu1 %v2531_v32  ;;  %v58_v54 = vsub.f32 %v35_v46, %v3099_v17  ;;  %v2581_v57 = vcombine.high %v3160_v50, %v3165_v51  ;;  %v38_v5 = vld [vmem:[%s4367_s0 + $0x40] sm:$0xff]  ;;  %v39_v6 = vld [vmem:[%s4367_s0 + $0x48] sm:$0xff]  ;;  %v40_v12 = vld [vmem:[%s4367_s0 + $0x50] sm:$0xff] }
   0xc   :  { %v3168_v52 = vpack.c.bf16 %v79_v43, %v78_v42  ;;  %v2583_v60 = vcombine.high %v3175_v55, %v3180_v56  ;;  %v80_v61 = vmul.f32 %v3104_v18, %v57_v53  ;;  %v59_v0 = vsub.f32 %v36_v58, %v3099_v17  ;;  %v41_v13 = vld [vmem:[%s4367_s0 + $0x58] sm:$0xff]  ;;  %v42_v21 = vld [vmem:[%s4367_s0 + $0x60] sm:$0xff]  ;;  %v43_v22 = vld [vmem:[%s4367_s0 + $0x68] sm:$0xff] }
   0xd   :  { %2532 = vmatmul.mubr.msk.bf16.vlgmr.msra.gmra.mxu0 %vm196_vm0, %v3130_v35  ;;  %2540 = vmatmul.mubr.msk.bf16.vlgmr.msra.gmra.mxu1 %vm196_vm0, %v3130_v35  ;;  %v81_v62 = vmul.f32 %v3104_v18, %v58_v54  ;;  %v60_v1 = vsub.f32 %v37_v59, %v3099_v17  ;;  %v61_v8 = vsub.f32 %v38_v5, %v3099_v17  ;;  %v44_v28 = vld [vmem:[%s4367_s0 + $0x70] sm:$0xff]  ;;  %v45_v29 = vld [vmem:[%s4367_s0 + $0x78] sm:$0xff]  ;;  %v690_v38 = vld [vmem:[%s4370_s5 + $0x8] sm:$0xff] }
   0xe   :  { %460 = vmatpush1.bf16.msra.mxu0 %v2528_v36  ;;  %573 = vmatpush1.bf16.msra.mxu1 %v2530_v39  ;;  %v82_v2 = vmul.f32 %v3104_v18, %v59_v0  ;;  %v62_v9 = vsub.f32 %v39_v6, %v3099_v17  ;;  %v63_v15 = vsub.f32 %v40_v12, %v3099_v17  ;;  %v694_v39 = vld [vmem:[%s4370_s5 + $0x28] sm:$0xff]  ;;  %v699_v42 = vld [vmem:[%s4370_s5 + $0x50] sm:$0xff]  ;;  %v700_v45 = vld [vmem:[%s4370_s5 + $0x58] sm:$0xff] }
   0xf   :  { %263 = vmatprep.mubr.bf16.mxu0 %v3013_v3  ;;  %376 = vmatprep.mubr.bf16.mxu1 %v3013_v3  ;;  %v3200_v63 = vpack.c.bf16 %v81_v62, %v80_v61  ;;  %v83_v4 = vmul.f32 %v3104_v18, %v60_v1  ;;  %v84_v10 = vmul.f32 %v3104_v18, %v61_v8  ;;  %v703_v43 = vld [vmem:[%s4370_s5 + $0x70] sm:$0xff]  ;;  %v704_v46 = vld [vmem:[%s4370_s5 + $0x78] sm:$0xff]  ;;  %v3388_v61 = vld [vmem:[%s4371_s1 + $0x8] sm:$0xff]  }
  0x10   :  { %461 = vmatprep.subr.bf16.mxu0 %v2521_v44  ;;  %574 = vmatprep.subr.bf16.mxu1 %v2523_v49  ;;  %v85_v11 = vmul.f32 %v3104_v18, %v62_v9  ;;  %v64_v16 = vsub.f32 %v41_v13, %v3099_v17  ;;  %v86_v19 = vmul.f32 %v3104_v18, %v63_v15  ;;  %v692_v54 = vld [vmem:[%s4370_s5 + $0x18] sm:$0xff]  ;;  %v3399_v62 = vld [vmem:[%s4371_s1 + $0x10] sm:$0xff]  }
  0x11   :  { %v3218_v7 = vpack.c.bf16 %v83_v4, %v82_v2  ;;  %v65_v24 = vsub.f32 %v42_v21, %v3099_v17  ;;  %v66_v25 = vsub.f32 %v43_v22, %v3099_v17  ;;  %v67_v31 = vsub.f32 %v44_v28, %v3099_v17  ;;  %v2951_v0 = vld [vmem:[%s4372_s6 + $0xf8] sm:$0xff]   ;;  %v3427_v2 = vld [vmem:[%s4371_s1 + $0x20] sm:$0xff]   ;;  %v3438_v4 = vld [vmem:[%s4371_s1 + $0x28] sm:$0xff]  }
  0x12   :  { %462 = vmatpush1.bf16.msra.mxu0 %v2520_v47  ;;  %575 = vmatpush1.bf16.msra.mxu1 %v2522_v48  ;;  %v3236_v14 = vpack.c.bf16 %v85_v11, %v84_v10  ;;  %v87_v20 = vmul.f32 %v3104_v18, %v64_v16  ;;  %v68_v32 = vsub.f32 %v45_v29, %v3099_v17  ;;  %v689_v17 = vld [vmem:[%s4370_s5] sm:$0xff]  ;;  %v3416_v1 = vld [vmem:[%s4371_s1 + $0x18] sm:$0xff]   ;;  %v3449_v5 = vld [vmem:[%s4371_s1 + $0x30] sm:$0xff]  }
  0x13   :  { %861 = vmatprep.subr.bf16.mxu0 %v2581_v57  ;;  %974 = vmatprep.subr.bf16.mxu1 %v2583_v60  ;;  %v88_v26 = vmul.f32 %v3104_v18, %v65_v24  ;;  %v89_v27 = vmul.f32 %v3104_v18, %v66_v25  ;;  %v90_v33 = vmul.f32 %v3104_v18, %v67_v31  ;;  %v3460_v6 = vld [vmem:[%s4371_s1 + $0x38] sm:$0xff]   ;;  %v2953_v9 = vld [vmem:[%s4372_s6 + $0x70] sm:$0xff]   ;;  %v2959_v21 = vld [vmem:[%s4372_s6 + $0xe8] sm:$0xff]  }
  0x14   :  { %v3254_v23 = vpack.c.bf16 %v87_v20, %v86_v19  ;;  %v91_v34 = vmul.f32 %v3104_v18, %v68_v32  ;;  %v693_v18 = vld [vmem:[%s4370_s5 + $0x20] sm:$0xff]  ;;  %v2580_v37 = vcombine.low %v3160_v50, %v3165_v51  ;;  %v2582_v40 = vcombine.low %v3175_v55, %v3180_v56  ;;  %v691_v51 = vld [vmem:[%s4370_s5 + $0x10] sm:$0xff]  ;;  %v696_v55 = vld [vmem:[%s4370_s5 + $0x38] sm:$0xff] }
  0x15   :  { %2533 = vmatmul.mubr.msk.bf16.gmra.mxu0 %vm196_vm0, %v3168_v52  ;;  %2541 = vmatmul.mubr.msk.bf16.gmra.mxu1 %vm196_vm0, %v3168_v52  ;;  %v3272_v30 = vpack.c.bf16 %v89_v27, %v88_v26  ;;  %v2573_v41 = vcombine.high %v689_v17, %v693_v18  ;;  %v2575_v44 = vcombine.high %v690_v38, %v694_v39  ;;  %v2952_v8 = vld [vmem:[%s4372_s6 + $0xb8] sm:$0xff]   ;;  %v2955_v10 = vld [vmem:[%s4372_s6 + $0xf0] sm:$0xff]   ;;  %v2957_v19 = vld [vmem:[%s4372_s6 + $0x68] sm:$0xff]  }
  0x16   :  { %273 = vmatprep.mubr.bf16.mxu0 %v3013_v3  ;;  %386 = vmatprep.mubr.bf16.mxu1 %v3013_v3  ;;  %v99_v36 = vpack.c.bf16 %v91_v34, %v90_v33  ;;  %v2572_v47 = vcombine.low %v689_v17, %v693_v18  ;;  %v2574_v48 = vcombine.low %v690_v38, %v694_v39  ;;  %v2956_v16 = vld [vmem:[%s4372_s6 + $0xb0] sm:$0xff]   ;;  %v2958_v24 = vld [vmem:[%s4372_s6 + $0x28] sm:$0xff]   ;;  %v2961_v27 = vld [vmem:[%s4372_s6 + $0x60] sm:$0xff]  }
  0x17   :  { %v2585_v49 = vcombine.high %v699_v42, %v703_v43  ;;  %v2587_v50 = vcombine.high %v700_v45, %v704_v46  ;;  %v2584_v53 = vcombine.low %v699_v42, %v703_v43  ;;  %v2586_v56 = vcombine.low %v700_v45, %v704_v46  ;;  %v2960_v26 = vld [vmem:[%s4372_s6 + $0xa8] sm:$0xff]   ;;  %v2963_v29 = vld [vmem:[%s4372_s6 + $0xe0] sm:$0xff]   ;;  %v2967_v18 = vld [vmem:[%s4372_s6 + $0xd8] sm:$0xff]  }
  0x18   :  { %v2579_v58 = vcombine.high %v692_v54, %v696_v55  ;;  %v2578_v60 = vcombine.low %v692_v54, %v696_v55  ;;  %v2962_v32 = vld [vmem:[%s4372_s6 + $0x20] sm:$0xff]   ;;  %v2966_v39 = vld [vmem:[%s4372_s6 + $0x18] sm:$0xff]   ;;  %v2969_v42 = vld [vmem:[%s4372_s6 + $0x50] sm:$0xff]  }
  0x19   :  { %v2964_v34 = vld [vmem:[%s4372_s6 + $0xa0] sm:$0xff]   ;;  %v2974_v54 = vld [vmem:[%s4372_s6 + $0x8] sm:$0xff]  }
  0x1d   :  { %2534 = vmatmul.mubr.msk.bf16.gmra.mxu0 %vm196_vm0, %v3200_v63  ;;  %2542 = vmatmul.mubr.msk.bf16.gmra.mxu1 %vm196_vm0, %v3200_v63 }
  0x1e   :  { %283 = vmatprep.mubr.bf16.mxu0 %v3013_v3  ;;  %396 = vmatprep.mubr.bf16.mxu1 %v3013_v3 }
  0x25   :  { %2535 = vmatmul.mubr.msk.bf16.gmra.mxu0 %vm196_vm0, %v3218_v7  ;;  %2543 = vmatmul.mubr.msk.bf16.gmra.mxu1 %vm196_vm0, %v3218_v7 }
  0x26   :  { %293 = vmatprep.mubr.bf16.mxu0 %v3013_v3  ;;  %406 = vmatprep.mubr.bf16.mxu1 %v3013_v3 }
  0x2d   :  { %2536 = vmatmul.mubr.msk.bf16.gmra.mxu0 %vm196_vm0, %v3236_v14  ;;  %2544 = vmatmul.mubr.msk.bf16.gmra.mxu1 %vm196_vm0, %v3236_v14 }
  0x2e   :  { %303 = vmatprep.mubr.bf16.mxu0 %v3013_v3  ;;  %416 = vmatprep.mubr.bf16.mxu1 %v3013_v3 }
  0x35   :  { %2537 = vmatmul.mubr.msk.bf16.gmra.mxu0 %vm196_vm0, %v3254_v23  ;;  %2545 = vmatmul.mubr.msk.bf16.gmra.mxu1 %vm196_vm0, %v3254_v23 }
  0x36   :  { %313 = vmatprep.mubr.bf16.mxu0 %v3013_v3  ;;  %426 = vmatprep.mubr.bf16.mxu1 %v3013_v3 }
  0x3d   :  { %2538 = vmatmul.mubr.msk.bf16.gmra.mxu0 %vm196_vm0, %v3272_v30  ;;  %2546 = vmatmul.mubr.msk.bf16.gmra.mxu1 %vm196_vm0, %v3272_v30 }
  0x3e   :  { %323 = vmatprep.mubr.bf16.mxu0 %v3013_v3  ;;  %436 = vmatprep.mubr.bf16.mxu1 %v3013_v3 }
  0x45   :  { %2539 = vmatmul.mubr.msk.bf16.gmra.mxu0 %vm196_vm0, %v99_v36  ;;  %2547 = vmatmul.mubr.msk.bf16.gmra.mxu1 %vm196_vm0, %v99_v36 }
  0x46   :  { %479 = vmatprep.mubr.bf16.mxu0 %v3013_v3  ;;  %592 = vmatprep.mubr.bf16.mxu1 %v3013_v3 }
  0x4d   :  { %2548 = vmatmul.mubr.msk.bf16.vlgmr.msra.gmra.mxu0 %vm196_vm0, %v3130_v35  ;;  %2556 = vmatmul.mubr.msk.bf16.vlgmr.msra.gmra.mxu1 %vm196_vm0, %v3130_v35  ;;  %v3365_v35 = vld [vmem:[%s4371_s1] sm:$0xff]  }
  0x4e   :  { %862 = vmatpush1.bf16.msra.mxu0 %v2580_v37  ;;  %975 = vmatpush1.bf16.msra.mxu1 %v2582_v40 }
  0x4f   :  { %489 = vmatprep.mubr.bf16.mxu0 %v3013_v3  ;;  %602 = vmatprep.mubr.bf16.mxu1 %v3013_v3 }
  0x50   :  { %863 = vmatprep.subr.bf16.mxu0 %v2573_v41  ;;  %976 = vmatprep.subr.bf16.mxu1 %v2575_v44  ;;  %v2968_v41 = vld [vmem:[%s4372_s6 + $0x98] sm:$0xff]   ;;  %v2971_v44 = vld [vmem:[%s4372_s6 + $0xd0] sm:$0xff]  }
  0x52   :  { %864 = vmatpush1.bf16.msra.mxu0 %v2572_v47  ;;  %977 = vmatpush1.bf16.msra.mxu1 %v2574_v48  ;;  %v2970_v47 = vld [vmem:[%s4372_s6 + $0x10] sm:$0xff]  }
  0x53   :  { %1087 = vmatprep.subr.bf16.mxu0 %v2585_v49  ;;  %1200 = vmatprep.subr.bf16.mxu1 %v2587_v50  ;;  %v2972_v49 = vld [vmem:[%s4372_s6 + $0x90] sm:$0xff]   ;;  %v2973_v50 = vld [vmem:[%s4372_s6 + $0x48] sm:$0xff]  }
  0x55   :  { %2549 = vmatmul.mubr.msk.bf16.gmra.mxu0 %vm196_vm0, %v3168_v52  ;;  %2557 = vmatmul.mubr.msk.bf16.gmra.mxu1 %vm196_vm0, %v3168_v52  ;;  %v695_v52 = vld [vmem:[%s4370_s5 + $0x30] sm:$0xff] }
  0x56   :  { %499 = vmatprep.mubr.bf16.mxu0 %v3013_v3  ;;  %612 = vmatprep.mubr.bf16.mxu1 %v3013_v3  ;;  %v2577_v57 = vcombine.high %v691_v51, %v695_v52  ;;  %v2576_v59 = vcombine.low %v691_v51, %v695_v52  ;;  %v2975_v51 = vld [vmem:[%s4372_s6 + $0xc8] sm:$0xff]  }
  0x5d   :  { %2550 = vmatmul.mubr.msk.bf16.gmra.mxu0 %vm196_vm0, %v3200_v63  ;;  %2558 = vmatmul.mubr.msk.bf16.gmra.mxu1 %vm196_vm0, %v3200_v63  ;;  %v2949_v63 = vld [vmem:[%s4372_s6 + $0x78] sm:$0xff]  }
  0x5e   :  { %509 = vmatprep.mubr.bf16.mxu0 %v3013_v3  ;;  %622 = vmatprep.mubr.bf16.mxu1 %v3013_v3 }
  0x65   :  { %2551 = vmatmul.mubr.msk.bf16.gmra.mxu0 %vm196_vm0, %v3218_v7  ;;  %2559 = vmatmul.mubr.msk.bf16.gmra.mxu1 %vm196_vm0, %v3218_v7  ;;  %v2950_v7 = vld [vmem:[%s4372_s6 + $0x38] sm:$0xff]  }
  0x66   :  { %519 = vmatprep.mubr.bf16.mxu0 %v3013_v3  ;;  %632 = vmatprep.mubr.bf16.mxu1 %v3013_v3 }
  0x6d   :  { %2552 = vmatmul.mubr.msk.bf16.gmra.mxu0 %vm196_vm0, %v3236_v14  ;;  %2560 = vmatmul.mubr.msk.bf16.gmra.mxu1 %vm196_vm0, %v3236_v14  ;;  %v2954_v14 = vld [vmem:[%s4372_s6 + $0x30] sm:$0xff]  }
  0x6e   :  { %529 = vmatprep.mubr.bf16.mxu0 %v3013_v3  ;;  %642 = vmatprep.mubr.bf16.mxu1 %v3013_v3 }
  0x75   :  { %2553 = vmatmul.mubr.msk.bf16.gmra.mxu0 %vm196_vm0, %v3254_v23  ;;  %2561 = vmatmul.mubr.msk.bf16.gmra.mxu1 %vm196_vm0, %v3254_v23 }
  0x76   :  { %539 = vmatprep.mubr.bf16.mxu0 %v3013_v3  ;;  %652 = vmatprep.mubr.bf16.mxu1 %v3013_v3 }
  0x7d   :  { %2554 = vmatmul.mubr.msk.bf16.gmra.mxu0 %vm196_vm0, %v3272_v30  ;;  %2562 = vmatmul.mubr.msk.bf16.gmra.mxu1 %vm196_vm0, %v3272_v30 }
  0x7e   :  { %549 = vmatprep.mubr.bf16.mxu0 %v3013_v3  ;;  %662 = vmatprep.mubr.bf16.mxu1 %v3013_v3 }
  0x85   :  { %2555 = vmatmul.mubr.msk.bf16.gmra.mxu0 %vm196_vm0, %v99_v36  ;;  %2563 = vmatmul.mubr.msk.bf16.gmra.mxu1 %vm196_vm0, %v99_v36  ;;  %v2965_v36 = vld [vmem:[%s4372_s6 + $0x58] sm:$0xff]  }
  0x86   :  { %881 = vmatprep.mubr.bf16.mxu0 %v3013_v3  ;;  %994 = vmatprep.mubr.bf16.mxu1 %v3013_v3 }
  0x8d   :  { %2588 = vmatmul.mubr.msk.bf16.vlgmr.msra.gmra.mxu0 %vm196_vm0, %v3365_v35  ;;  %2596 = vmatmul.mubr.msk.bf16.vlgmr.msra.gmra.mxu1 %vm196_vm0, %v3365_v35 }
  0x8e   :  { %1088 = vmatpush1.bf16.msra.mxu0 %v2584_v53  ;;  %1201 = vmatpush1.bf16.msra.mxu1 %v2586_v56  ;;  %v2976_v56 = vld [vmem:[%s4372_s6 + $0x88] sm:$0xff]  }
  0x8f   :  { %891 = vmatprep.mubr.bf16.mxu0 %v3013_v3  ;;  %1004 = vmatprep.mubr.bf16.mxu1 %v3013_v3 }
  0x90   :  { %1089 = vmatprep.subr.bf16.mxu0 %v2577_v57  ;;  %1202 = vmatprep.subr.bf16.mxu1 %v2579_v58  ;;  %v2977_v57 = vld [vmem:[%s4372_s6 + $0x40] sm:$0xff]  }
  0x92   :  { %1090 = vmatpush1.bf16.msra.mxu0 %v2576_v59  ;;  %1203 = vmatpush1.bf16.msra.mxu1 %v2578_v60  ;;  %v2979_v59 = vld [vmem:[%s4372_s6 + $0xc0] sm:$0xff]  }
  0x93   :  { %2684 = vmatprep.subr.bf16.mxu0 %v2949_v63  ;;  %2748 = vmatprep.subr.bf16.mxu1 %v2951_v0  ;;  %v2980_v0 = vld [vmem:[%s4372_s6 + $0x80] sm:$0xff]  }
  0x95   :  { %2589 = vmatmul.mubr.msk.bf16.gmra.mxu0 %vm196_vm0, %v3388_v61  ;;  %2597 = vmatmul.mubr.msk.bf16.gmra.mxu1 %vm196_vm0, %v3388_v61 }
  0x96   :  { %901 = vmatprep.mubr.bf16.mxu0 %v3013_v3  ;;  %1014 = vmatprep.mubr.bf16.mxu1 %v3013_v3 }
  0x9d   :  { %2590 = vmatmul.mubr.msk.bf16.gmra.mxu0 %vm196_vm0, %v3399_v62  ;;  %2598 = vmatmul.mubr.msk.bf16.gmra.mxu1 %vm196_vm0, %v3399_v62 }
  0x9e   :  { %911 = vmatprep.mubr.bf16.mxu0 %v3013_v3  ;;  %1024 = vmatprep.mubr.bf16.mxu1 %v3013_v3 }
  0xa5   :  { %2591 = vmatmul.mubr.msk.bf16.gmra.mxu0 %vm196_vm0, %v3416_v1  ;;  %2599 = vmatmul.mubr.msk.bf16.gmra.mxu1 %vm196_vm0, %v3416_v1 }
  0xa6   :  { %921 = vmatprep.mubr.bf16.mxu0 %v3013_v3  ;;  %1034 = vmatprep.mubr.bf16.mxu1 %v3013_v3 }
  0xad   :  { %2592 = vmatmul.mubr.msk.bf16.gmra.mxu0 %vm196_vm0, %v3427_v2  ;;  %2600 = vmatmul.mubr.msk.bf16.gmra.mxu1 %vm196_vm0, %v3427_v2 }
  0xae   :  { %931 = vmatprep.mubr.bf16.mxu0 %v3013_v3  ;;  %1044 = vmatprep.mubr.bf16.mxu1 %v3013_v3 }
  0xb5   :  { %2593 = vmatmul.mubr.msk.bf16.gmra.mxu0 %vm196_vm0, %v3438_v4  ;;  %2601 = vmatmul.mubr.msk.bf16.gmra.mxu1 %vm196_vm0, %v3438_v4 }
  0xb6   :  { %941 = vmatprep.mubr.bf16.mxu0 %v3013_v3  ;;  %1054 = vmatprep.mubr.bf16.mxu1 %v3013_v3 }
  0xbd   :  { %2594 = vmatmul.mubr.msk.bf16.gmra.mxu0 %vm196_vm0, %v3449_v5  ;;  %2602 = vmatmul.mubr.msk.bf16.gmra.mxu1 %vm196_vm0, %v3449_v5 }
  0xbe   :  { %951 = vmatprep.mubr.bf16.mxu0 %v3013_v3  ;;  %1064 = vmatprep.mubr.bf16.mxu1 %v3013_v3 }
  0xc5   :  { %2595 = vmatmul.mubr.msk.bf16.gmra.mxu0 %vm196_vm0, %v3460_v6  ;;  %2603 = vmatmul.mubr.msk.bf16.gmra.mxu1 %vm196_vm0, %v3460_v6 }
  0xc6   :  { %1107 = vmatprep.mubr.bf16.mxu0 %v3013_v3  ;;  %1220 = vmatprep.mubr.bf16.mxu1 %v3013_v3 }
  0xcd   :  { %v3480_v11 = vpop.f32.mrf.mxu0  ;;  %2604 = vmatmul.mubr.msk.bf16.vlgmr.msra.gmra.mxu0 %vm196_vm0, %v3365_v35  ;;  %v3484_v12 = vpop.f32.mrf.mxu1  ;;  %2612 = vmatmul.mubr.msk.bf16.vlgmr.msra.gmra.mxu1 %vm196_vm0, %v3365_v35 }
  0xce   :  { %1117 = vmatprep.mubr.bf16.mxu0 %v3013_v3  ;;  %1230 = vmatprep.mubr.bf16.mxu1 %v3013_v3 }
  0xcf   :  { %v3489_v13 = vpop.f32.mrf.mxu0  ;;  %2685 = vmatpush3.bf16.msra.mxu0 %v2950_v7  ;;  %v3495_v15 = vpop.f32.mrf.mxu1  ;;  %2749 = vmatpush3.bf16.msra.mxu1 %v2952_v8  ;;  %v2983_v8 = vld [vmem:[%s4372_s6 + $0x1f8] sm:$0xff]  }
  0xd0   :  { %2686 = vmatprep.subr.bf16.mxu0 %v2953_v9  ;;  %2750 = vmatprep.subr.bf16.mxu1 %v2955_v10 }
  0xd1   :  { %v3503_v20 = vpop.f32.mrf.mxu0  ;;  %v3508_v22 = vpop.f32.mrf.mxu1 }
  0xd3   :  { %v3510_v23 = vpop.f32.mrf.mxu0  ;;  %2687 = vmatpush3.bf16.msra.mxu0 %v2954_v14  ;;  %v3515_v25 = vpop.f32.mrf.mxu1  ;;  %2751 = vmatpush3.bf16.msra.mxu1 %v2956_v16 }
  0xd4   :  { %2688 = vmatprep.subr.bf16.mxu0 %v2957_v19  ;;  %2752 = vmatprep.subr.bf16.mxu1 %v2959_v21 }
  0xd5   :  { %v3523_v28 = vpop.f32.mrf.mxu0  ;;  %2605 = vmatmul.mubr.msk.bf16.gmra.mxu0 %vm196_vm0, %v3388_v61  ;;  %v3530_v30 = vpop.f32.mrf.mxu1  ;;  %2613 = vmatmul.mubr.msk.bf16.gmra.mxu1 %vm196_vm0, %v3388_v61 }
  0xd6   :  { %1127 = vmatprep.mubr.bf16.mxu0 %v3013_v3  ;;  %1240 = vmatprep.mubr.bf16.mxu1 %v3013_v3 }
  0xd7   :  { %v3535_v31 = vpop.f32.mrf.mxu0  ;;  %2689 = vmatpush3.bf16.msra.mxu0 %v2958_v24  ;;  %v3541_v33 = vpop.f32.mrf.mxu1  ;;  %2753 = vmatpush3.bf16.msra.mxu1 %v2960_v26 }
  0xd8   :  { %2690 = vmatprep.subr.bf16.mxu0 %v2961_v27  ;;  %2754 = vmatprep.subr.bf16.mxu1 %v2963_v29 }
  0xd9   :  { %v3549_v17 = vpop.f32.mrf.mxu0  ;;  %v3554_v37 = vpop.f32.mrf.mxu1 }
  0xdb   :  { %v3556_v38 = vpop.f32.mrf.mxu0  ;;  %2691 = vmatpush3.bf16.msra.mxu0 %v2962_v32  ;;  %v3561_v40 = vpop.f32.mrf.mxu1  ;;  %2755 = vmatpush3.bf16.msra.mxu1 %v2964_v34 }
  0xdc   :  { %2692 = vmatprep.subr.bf16.mxu0 %v2965_v36  ;;  %2756 = vmatprep.subr.bf16.mxu1 %v2967_v18 }
  0xdd   :  { %v3569_v43 = vpop.f32.mrf.mxu0  ;;  %2606 = vmatmul.mubr.msk.bf16.gmra.mxu0 %vm196_vm0, %v3399_v62  ;;  %v3576_v45 = vpop.f32.mrf.mxu1  ;;  %2614 = vmatmul.mubr.msk.bf16.gmra.mxu1 %vm196_vm0, %v3399_v62  ;;  %v2978_v62 = vld [vmem:[%s4372_s6] sm:$0xff]  }
  0xde   :  { %1137 = vmatprep.mubr.bf16.mxu0 %v3013_v3  ;;  %1250 = vmatprep.mubr.bf16.mxu1 %v3013_v3 }
  0xdf   :  { %v3581_v46 = vpop.f32.mrf.mxu0  ;;  %2693 = vmatpush3.bf16.msra.mxu0 %v2966_v39  ;;  %v3587_v48 = vpop.f32.mrf.mxu1  ;;  %2757 = vmatpush3.bf16.msra.mxu1 %v2968_v41 }
  0xe0   :  { %2694 = vmatprep.subr.bf16.mxu0 %v2969_v42  ;;  %2758 = vmatprep.subr.bf16.mxu1 %v2971_v44 }
  0xe1   :  { %v3595_v35 = vpop.f32.mrf.mxu0  ;;  %v3600_v52 = vpop.f32.mrf.mxu1 }
  0xe3   :  { %v3602_v53 = vpop.f32.mrf.mxu0  ;;  %2695 = vmatpush3.bf16.msra.mxu0 %v2970_v47  ;;  %v3607_v55 = vpop.f32.mrf.mxu1  ;;  %2759 = vmatpush3.bf16.msra.mxu1 %v2972_v49 }
  0xe4   :  { %2696 = vmatprep.subr.bf16.mxu0 %v2973_v50  ;;  %2760 = vmatprep.subr.bf16.mxu1 %v2975_v51 }
  0xe5   :  { %v3615_v58 = vpop.f32.mrf.mxu0  ;;  %2607 = vmatmul.mubr.msk.bf16.gmra.mxu0 %vm196_vm0, %v3416_v1  ;;  %v3622_v60 = vpop.f32.mrf.mxu1  ;;  %2615 = vmatmul.mubr.msk.bf16.gmra.mxu1 %vm196_vm0, %v3416_v1  ;;  %v2981_v1 = vld [vmem:[%s4372_s6 + $0x178] sm:$0xff]  }
  0xe6   :  { %1147 = vmatprep.mubr.bf16.mxu0 %v3013_v3  ;;  %1260 = vmatprep.mubr.bf16.mxu1 %v3013_v3 }
  0xe7   :  { %v3627_v61 = vpop.f32.mrf.mxu0  ;;  %2697 = vmatpush3.bf16.msra.mxu0 %v2974_v54  ;;  %v3633_v63 = vpop.f32.mrf.mxu1  ;;  %2761 = vmatpush3.bf16.msra.mxu1 %v2976_v56 }
  0xe8   :  { %2698 = vmatprep.subr.bf16.mxu0 %v2977_v57  ;;  %2762 = vmatprep.subr.bf16.mxu1 %v2979_v59 }
  0xe9   :  { %v3641_v7 = vpop.f32.mrf.mxu0  ;;  %v3646_v9 = vpop.f32.mrf.mxu1 }
  0xeb   :  { %v3648_v10 = vpop.f32.mrf.mxu0  ;;  %2699 = vmatpush3.bf16.msra.mxu0 %v2978_v62  ;;  %v3650_v14 = vpop.f32.mrf.mxu1  ;;  %2763 = vmatpush3.bf16.msra.mxu1 %v2980_v0 }
  0xec   :  { %2812 = vmatprep.subr.bf16.mxu0 %v2981_v1  ;;  %2876 = vmatprep.subr.bf16.mxu1 %v2983_v8 }
  0xed   :  { %v3652_v16 = vpop.f32.mrf.mxu0  ;;  %2608 = vmatmul.mubr.msk.bf16.gmra.mxu0 %vm196_vm0, %v3427_v2  ;;  %v3656_v19 = vpop.f32.mrf.mxu1  ;;  %2616 = vmatmul.mubr.msk.bf16.gmra.mxu1 %vm196_vm0, %v3427_v2 }
  0xee   :  { %1157 = vmatprep.mubr.bf16.mxu0 %v3013_v3  ;;  %1270 = vmatprep.mubr.bf16.mxu1 %v3013_v3 }
  0xef   :  { %v3661_v21 = vpop.f32.mrf.mxu0  ;;  %v3664_v24 = vpop.f32.mrf.mxu1 }
  0xf1   :  { %v3666_v26 = vpop.f32.mrf.mxu0  ;;  %v3668_v27 = vpop.f32.mrf.mxu1 }
  0xf3   :  { %v3670_v29 = vpop.f32.mrf.mxu0  ;;  %v3672_v32 = vpop.f32.mrf.mxu1 }
  0xf5   :  { %v3674_v34 = vpop.f32.mrf.mxu0  ;;  %2609 = vmatmul.mubr.msk.bf16.gmra.mxu0 %vm196_vm0, %v3438_v4  ;;  %v3678_v2 = vpop.f32.mrf.mxu1  ;;  %2617 = vmatmul.mubr.msk.bf16.gmra.mxu1 %vm196_vm0, %v3438_v4 }
  0xf6   :  { %4376 = vst [vmem:[#allocation2_spill] sm:$0xff] %v3678_v2  ;;  %1167 = vmatprep.mubr.bf16.mxu0 %v3013_v3  ;;  %1280 = vmatprep.mubr.bf16.mxu1 %v3013_v3 }
  0xf7   :  { %v3683_v36 = vpop.f32.mrf.mxu0  ;;  %v3686_v18 = vpop.f32.mrf.mxu1 }
  0xf8   :  { %4377 = vst [vmem:[#allocation3_spill] sm:$0xff] %v3686_v18 }
  0xf9   :  { %v3688_v39 = vpop.f32.mrf.mxu0  ;;  %v3690_v41 = vpop.f32.mrf.mxu1 }
  0xfb   :  { %v3692_v42 = vpop.f32.mrf.mxu0  ;;  %v3694_v44 = vpop.f32.mrf.mxu1 }
  0xfc   :  { %4378 = vst [vmem:[#allocation4_spill] sm:$0xff] %v3694_v44 }
  0xfd   :  { %v3696_v47 = vpop.f32.mrf.mxu0  ;;  %2610 = vmatmul.mubr.msk.bf16.gmra.mxu0 %vm196_vm0, %v3449_v5  ;;  %v3700_v4 = vpop.f32.mrf.mxu1  ;;  %2618 = vmatmul.mubr.msk.bf16.gmra.mxu1 %vm196_vm0, %v3449_v5 }
  0xfe   :  { %4379 = vst [vmem:[#allocation5_spill] sm:$0xff] %v3696_v47  ;;  %4380 = vst [vmem:[#allocation6_spill] sm:$0xff] %v3700_v4  ;;  %1177 = vmatprep.mubr.bf16.mxu0 %v3013_v3  ;;  %1290 = vmatprep.mubr.bf16.mxu1 %v3013_v3 }
  0xff   :  { %v3705_v49 = vpop.f32.mrf.mxu0  ;;  %v3708_v50 = vpop.f32.mrf.mxu1 }
 0x100   :  { %4381 = vst [vmem:[#allocation7_spill] sm:$0xff] %v3705_v49  ;;  %4382 = vst [vmem:[#allocation8_spill] sm:$0xff] %v3708_v50 }
 0x101   :  { %v3710_v51 = vpop.f32.mrf.mxu0  ;;  %v3712_v54 = vpop.f32.mrf.mxu1 }
 0x102   :  { %4383 = vst [vmem:[#allocation9_spill] sm:$0xff] %v3710_v51  ;;  %4384 = vst [vmem:[#allocation10_spill] sm:$0xff] %v3712_v54 }
 0x103   :  { %v3714_v56 = vpop.f32.mrf.mxu0  ;;  %v3716_v57 = vpop.f32.mrf.mxu1 }
 0x104   :  { %4385 = vst [vmem:[#allocation11_spill] sm:$0xff] %v3714_v56  ;;  %4386 = vst [vmem:[#allocation12_spill] sm:$0xff] %v3716_v57 }
 0x105   :  { %v3718_v59 = vpop.f32.mrf.mxu0  ;;  %2611 = vmatmul.mubr.msk.bf16.gmra.mxu0 %vm196_vm0, %v3460_v6  ;;  %v3722_v5 = vpop.f32.mrf.mxu1  ;;  %2619 = vmatmul.mubr.msk.bf16.gmra.mxu1 %vm196_vm0, %v3460_v6 }
 0x106   :  { %4387 = vst [vmem:[#allocation13_spill] sm:$0xff] %v3718_v59  ;;  %4388 = vst [vmem:[#allocation14_spill] sm:$0xff] %v3722_v5 }
 0x107   :  { %v3726_v3 = vpop.f32.mrf.mxu0  ;;  %v3728_v62 = vpop.f32.mrf.mxu1 }
 0x108   :  { %4389 = vst [vmem:[#allocation15_spill] sm:$0xff] %v3726_v3  ;;  %4390 = vst [vmem:[#allocation16_spill] sm:$0xff] %v3728_v62 }
 0x109   :  { %v3730_v0 = vpop.f32.mrf.mxu0  ;;  %v3732_v1 = vpop.f32.mrf.mxu1 }
 0x10a   :  { %4391 = vst [vmem:[#allocation17_spill] sm:$0xff] %v3730_v0  ;;  %4392 = vst [vmem:[#allocation18_spill] sm:$0xff] %v3732_v1 }
 0x10b   :  { %v3734_v8 = vpop.f32.mrf.mxu0  ;;  %v3736_v4 = vpop.f32.mrf.mxu1 }
 0x10c   :  { %4393 = vst [vmem:[#allocation19_spill] sm:$0xff] %v3734_v8  ;;  %4394 = vst [vmem:[#allocation20_spill] sm:$0xff] %v3736_v4 }
 0x10d   :  { %v3738_v59 = vpop.f32.mrf.mxu0  ;;  %v3740_v57 = vpop.f32.mrf.mxu1 }
 0x10e   :  { %4395 = vst [vmem:[#allocation21_spill] sm:$0xff] %v3738_v59  ;;  %4396 = vst [vmem:[#allocation22_spill] sm:$0xff] %v3740_v57 }
 0x10f   :  { %v3742_v5 = vpop.f32.mrf.mxu0  ;;  %v3744_v50 = vpop.f32.mrf.mxu1 }
 0x110   :  { %4397 = vst [vmem:[#allocation23_spill] sm:$0xff] %v3742_v5  ;;  %4398 = vst [vmem:[#allocation24_spill] sm:$0xff] %v3744_v50 }
 0x111   :  { %v3746_v6 = vpop.f32.mrf.mxu0  ;;  %v3748_v3 = vpop.f32.mrf.mxu1 }
 0x112   :  { %4399 = vst [vmem:[#allocation25_spill] sm:$0xff] %v3746_v6  ;;  %4400 = vst [vmem:[#allocation26_spill] sm:$0xff] %v3748_v3 }
 0x113   :  { %v3750_v62 = vpop.f32.mrf.mxu0  ;;  %v3752_v0 = vpop.f32.mrf.mxu1 }
 0x114   :  { %4401 = vst [vmem:[#allocation27_spill] sm:$0xff] %v3750_v62  ;;  %4402 = vst [vmem:[#allocation28_spill] sm:$0xff] %v3752_v0 }
 0x115   :  { %v3754_v1 = vpop.f32.mrf.mxu0  ;;  %v3756_v8 = vpop.f32.mrf.mxu1 }
 0x116   :  { %4403 = vst [vmem:[#allocation29_spill] sm:$0xff] %v3754_v1  ;;  %4404 = vst [vmem:[#allocation30_spill] sm:$0xff] %v3756_v8 }
 0x117   :  { %v3758_v4 = vpop.f32.mrf.mxu0  ;;  %v3760_v59 = vpop.f32.mrf.mxu1 }
 0x118   :  { %4405 = vst [vmem:[#allocation31_spill] sm:$0xff] %v3758_v4  ;;  %4406 = vst [vmem:[#allocation32_spill] sm:$0xff] %v3760_v59 }
 0x119   :  { %v3762_v57 = vpop.f32.mrf.mxu0  ;;  %v3764_v5 = vpop.f32.mrf.mxu1 }
 0x11a   :  { %4407 = vst [vmem:[#allocation33_spill] sm:$0xff] %v3762_v57  ;;  %4408 = vst [vmem:[#allocation34_spill] sm:$0xff] %v3764_v5 }
 0x11b   :  { %v3766_v50 = vpop.f32.mrf.mxu0  ;;  %v3768_v6 = vpop.f32.mrf.mxu1 }
 0x11c   :  { %4409 = vst [vmem:[#allocation35_spill] sm:$0xff] %v3766_v50  ;;  %4410 = vst [vmem:[#allocation36_spill] sm:$0xff] %v3768_v6 }
 0x11d   :  { %v3770_v3 = vpop.f32.mrf.mxu0  ;;  %v3772_v62 = vpop.f32.mrf.mxu1 }
 0x11e   :  { %4411 = vst [vmem:[#allocation37_spill] sm:$0xff] %v3770_v3  ;;  %4412 = vst [vmem:[#allocation38_spill] sm:$0xff] %v3772_v62 }
 0x11f   :  { %v3774_v0 = vpop.f32.mrf.mxu0  ;;  %v3776_v1 = vpop.f32.mrf.mxu1 }
 0x120   :  { %4413 = vst [vmem:[#allocation39_spill] sm:$0xff] %v3774_v0  ;;  %4414 = vst [vmem:[#allocation40_spill] sm:$0xff] %v3776_v1 }
 0x121   :  { %v3778_v8 = vpop.f32.mrf.mxu0  ;;  %v3780_v4 = vpop.f32.mrf.mxu1 }
 0x122   :  { %4415 = vst [vmem:[#allocation41_spill] sm:$0xff] %v3778_v8  ;;  %4416 = vst [vmem:[#allocation42_spill] sm:$0xff] %v3780_v4 }
 0x123   :  { %v3782_v59 = vpop.f32.mrf.mxu0  ;;  %v3784_v57 = vpop.f32.mrf.mxu1 }
 0x124   :  { %4417 = vst [vmem:[#allocation43_spill] sm:$0xff] %v3782_v59  ;;  %4418 = vst [vmem:[#allocation44_spill] sm:$0xff] %v3784_v57 }
 0x125   :  { %v3786_v5 = vpop.f32.mrf.mxu0  ;;  %v3788_v50 = vpop.f32.mrf.mxu1 }
 0x126   :  { %4419 = vst [vmem:[#allocation45_spill] sm:$0xff] %v3786_v5  ;;  %4420 = vst [vmem:[#allocation46_spill] sm:$0xff] %v3788_v50 }
 0x127   :  { %v3790_v6 = vpop.f32.mrf.mxu0  ;;  %v3792_v3 = vpop.f32.mrf.mxu1 }
 0x128   :  { %4421 = vst [vmem:[#allocation47_spill] sm:$0xff] %v3790_v6  ;;  %4422 = vst [vmem:[#allocation48_spill] sm:$0xff] %v3792_v3 }
 0x129   :  { %v3794_v62 = vpop.f32.mrf.mxu0  ;;  %v3796_v0 = vpop.f32.mrf.mxu1 }
 0x12a   :  { %4423 = vst [vmem:[#allocation49_spill] sm:$0xff] %v3794_v62  ;;  %4424 = vst [vmem:[#allocation50_spill] sm:$0xff] %v3796_v0 }
 0x12b   :  { %v3798_v1 = vpop.f32.mrf.mxu0  ;;  %v3800_v8 = vpop.f32.mrf.mxu1 }
 0x12c   :  { %4425 = vst [vmem:[#allocation51_spill] sm:$0xff] %v3798_v1  ;;  %4426 = vst [vmem:[#allocation52_spill] sm:$0xff] %v3800_v8 }
 0x12d   :  { %v3802_v4 = vpop.f32.mrf.mxu0  ;;  %v3804_v59 = vpop.f32.mrf.mxu1 }
 0x12e   :  { %4427 = vst [vmem:[#allocation53_spill] sm:$0xff] %v3802_v4  ;;  %4428 = vst [vmem:[#allocation54_spill] sm:$0xff] %v3804_v59 }
 0x12f   :  { %v3806_v57 = vpop.f32.mrf.mxu0  ;;  %v3808_v5 = vpop.f32.mrf.mxu1 }
 0x130   :  { %4429 = vst [vmem:[#allocation55_spill] sm:$0xff] %v3806_v57  ;;  %4430 = vst [vmem:[#allocation56_spill] sm:$0xff] %v3808_v5 }
 0x131   :  { %v3810_v50 = vpop.f32.mrf.mxu0  ;;  %v3812_v6 = vpop.f32.mrf.mxu1 }
 0x132   :  { %4431 = vst [vmem:[#allocation57_spill] sm:$0xff] %v3810_v50  ;;  %4432 = vst [vmem:[#allocation58_spill] sm:$0xff] %v3812_v6 }
 0x133   :  { %v3814_v3 = vpop.f32.mrf.mxu0  ;;  %v3816_v62 = vpop.f32.mrf.mxu1 }
 0x134   :  { %4433 = vst [vmem:[#allocation59_spill] sm:$0xff] %v3814_v3  ;;  %4434 = vst [vmem:[#allocation60_spill] sm:$0xff] %v3816_v62 }
 0x135   :  { %v3818_v0 = vpop.f32.mrf.mxu0  ;;  %v3820_v1 = vpop.f32.mrf.mxu1 }
 0x136   :  { %4435 = vst [vmem:[#allocation61_spill] sm:$0xff] %v3818_v0  ;;  %4436 = vst [vmem:[#allocation62_spill] sm:$0xff] %v3820_v1 }
 0x137   :  { %v3822_v8 = vpop.f32.mrf.mxu0  ;;  %v3824_v4 = vpop.f32.mrf.mxu1 }
 0x138   :  { %4437 = vst [vmem:[#allocation63_spill] sm:$0xff] %v3822_v8  ;;  %4438 = vst [vmem:[#allocation64_spill] sm:$0xff] %v3824_v4 }
 0x139   :  { %v3826_v59 = vpop.f32.mrf.mxu0  ;;  %v3828_v57 = vpop.f32.mrf.mxu1 }
 0x13a   :  { %4439 = vst [vmem:[#allocation65_spill] sm:$0xff] %v3826_v59  ;;  %4440 = vst [vmem:[#allocation66_spill] sm:$0xff] %v3828_v57 }
 0x13b   :  { %v3830_v5 = vpop.f32.mrf.mxu0  ;;  %v3832_v50 = vpop.f32.mrf.mxu1 }
 0x13c   :  { %4441 = vst [vmem:[#allocation67_spill] sm:$0xff] %v3830_v5  ;;  %4442 = vst [vmem:[#allocation68_spill] sm:$0xff] %v3832_v50 }
 0x13d   :  { %v3834_v6 = vpop.f32.mrf.mxu0  ;;  %v3836_v3 = vpop.f32.mrf.mxu1 }
 0x13e   :  { %4443 = vst [vmem:[#allocation69_spill] sm:$0xff] %v3834_v6  ;;  %4444 = vst [vmem:[#allocation70_spill] sm:$0xff] %v3836_v3 }
 0x13f   :  { %v3838_v62 = vpop.f32.mrf.mxu0  ;;  %v3840_v0 = vpop.f32.mrf.mxu1 }
 0x140   :  { %4445 = vst [vmem:[#allocation71_spill] sm:$0xff] %v3838_v62  ;;  %4446 = vst [vmem:[#allocation72_spill] sm:$0xff] %v3840_v0 }
 0x141   :  { %v3842_v1 = vpop.f32.mrf.mxu0  ;;  %v3844_v8 = vpop.f32.mrf.mxu1 }
 0x142   :  { %4447 = vst [vmem:[#allocation73_spill] sm:$0xff] %v3842_v1  ;;  %4448 = vst [vmem:[#allocation74_spill] sm:$0xff] %v3844_v8 }
 0x143   :  { %v3846_v4 = vpop.f32.mrf.mxu0  ;;  %v3848_v59 = vpop.f32.mrf.mxu1 }
 0x144   :  { %4449 = vst [vmem:[#allocation75_spill] sm:$0xff] %v3846_v4  ;;  %4450 = vst [vmem:[#allocation76_spill] sm:$0xff] %v3848_v59 }
 0x145   :  { %v3850_v57 = vpop.f32.mrf.mxu0  ;;  %v3852_v5 = vpop.f32.mrf.mxu1 }
 0x146   :  { %4451 = vst [vmem:[#allocation77_spill] sm:$0xff] %v3850_v57  ;;  %4452 = vst [vmem:[#allocation78_spill] sm:$0xff] %v3852_v5 }
 0x147   :  { %v3854_v50 = vpop.f32.mrf.mxu0  ;;  %v3856_v6 = vpop.f32.mrf.mxu1 }
 0x148   :  { %4453 = vst [vmem:[#allocation79_spill] sm:$0xff] %v3854_v50  ;;  %4454 = vst [vmem:[#allocation80_spill] sm:$0xff] %v3856_v6 }
 0x149   :  { %v3858_v3 = vpop.f32.mrf.mxu0  ;;  %v3860_v62 = vpop.f32.mrf.mxu1 }
 0x14a   :  { %4455 = vst [vmem:[#allocation81_spill] sm:$0xff] %v3858_v3  ;;  %4456 = vst [vmem:[#allocation82_spill] sm:$0xff] %v3860_v62 }
 0x14b   :  { %v3862_v0 = vpop.f32.mrf.mxu0  ;;  %v3864_v1 = vpop.f32.mrf.mxu1 }
 0x14c   :  { %4457 = vst [vmem:[#allocation83_spill] sm:$0xff] %v3862_v0  ;;  %4458 = vst [vmem:[#allocation84_spill] sm:$0xff] %v3864_v1 }
 0x14d   :  { %v883_v8 = vpop.f32.mrf.mxu0  ;;  %v996_v4 = vpop.f32.mrf.mxu1 }
 0x14e   :  { %v1301_v0 = vmul.f32 %v883_v8, %v3480_v11  ;;  %v1303_v2 = vmul.f32 %v996_v4, %v3484_v12  ;;  %v2984_v11 = vld [vmem:[%s4372_s6 + $0x1b8] sm:$0xff]   ;;  %v2987_v12 = vld [vmem:[%s4372_s6 + $0x1f0] sm:$0xff]  }
 0x14f   :  { %v885_v47 = vpop.f32.mrf.mxu0  ;;  %v998_v59 = vpop.f32.mrf.mxu1 }
 0x150   :  { %v1302_v50 = vmul.f32 %v885_v47, %v3489_v13  ;;  %v1304_v1 = vmul.f32 %v998_v59, %v3495_v15  ;;  %v2982_v13 = vld [vmem:[%s4372_s6 + $0x138] sm:$0xff]   ;;  %v2985_v15 = vld [vmem:[%s4372_s6 + $0x170] sm:$0xff]  }
 0x151   :  { %v887_v56 = vpop.f32.mrf.mxu0  ;;  %v1000_v57 = vpop.f32.mrf.mxu1 }
 0x152   :  { %v1309_v5 = vmul.f32 %v887_v56, %v3503_v20  ;;  %v1311_v6 = vmul.f32 %v1000_v57, %v3508_v22 }
 0x153   :  { %v889_v54 = vpop.f32.mrf.mxu0  ;;  %v1002_v62 = vpop.f32.mrf.mxu1 }
 0x154   :  { %v1310_v3 = vmul.f32 %v889_v54, %v3510_v23  ;;  %v1312_v49 = vmul.f32 %v1002_v62, %v3515_v25  ;;  %v1429_v20 = vpack.c.bf16 %v1309_v5, %v1301_v0  ;;  %v1431_v23 = vpack.c.bf16 %v1311_v6, %v1303_v2  ;;  %v2988_v2 = vld [vmem:[%s4372_s6 + $0x1b0] sm:$0xff]  }
 0x155   :  { %v893_v51 = vpop.f32.mrf.mxu0  ;;  %v1006_v18 = vpop.f32.mrf.mxu1 }
 0x156   :  { %v1430_v44 = vpack.c.bf16 %v1310_v3, %v1302_v50  ;;  %v1432_v22 = vpack.c.bf16 %v1312_v49, %v1304_v1  ;;  %v2986_v50 = vld [vmem:[%s4372_s6 + $0x130] sm:$0xff]   ;;  %v1317_v62 = vmul.f32 %v893_v51, %v3523_v28  ;;  %v1319_v6 = vmul.f32 %v1006_v18, %v3530_v30  ;;  %v2992_v28 = vld [vmem:[%s4372_s6 + $0x1a8] sm:$0xff]   ;;  %v2993_v30 = vld [vmem:[%s4372_s6 + $0x160] sm:$0xff]  }
 0x157   :  { %v895_v47 = vpop.f32.mrf.mxu0  ;;  %v1008_v25 = vpop.f32.mrf.mxu1  ;;  %v2995_v18 = vld [vmem:[%s4372_s6 + $0x1e0] sm:$0xff]  }
 0x158   :  { %2037 = vmatprep.mubr.bf16.mxu0 %v1430_v44  ;;  %2134 = vmatprep.mubr.bf16.mxu1 %v1432_v22  ;;  %v2989_v44 = vld [vmem:[%s4372_s6 + $0x168] sm:$0xff]   ;;  %v1318_v57 = vmul.f32 %v895_v47, %v3535_v31  ;;  %v1320_v0 = vmul.f32 %v1008_v25, %v3541_v33  ;;  %v2996_v25 = vld [vmem:[%s4372_s6 + $0x1a0] sm:$0xff]  }
 0x159   :  { %v897_v4 = vpop.f32.mrf.mxu0  ;;  %2038 = vmatmul.mubr.bf16.vlgmr.msra.gmra.mxu0 %v1429_v20  ;;  %v1010_v49 = vpop.f32.mrf.mxu1  ;;  %2135 = vmatmul.mubr.bf16.vlgmr.msra.gmra.mxu1 %v1431_v23 }
 0x15a   :  { %2813 = vmatpush3.bf16.msra.mxu0 %v2982_v13  ;;  %v1325_v54 = vmul.f32 %v897_v4, %v3549_v17  ;;  %2877 = vmatpush3.bf16.msra.mxu1 %v2984_v11  ;;  %v1327_v59 = vmul.f32 %v1010_v49, %v3554_v37  ;;  %v2991_v17 = vld [vmem:[%s4372_s6 + $0x1e8] sm:$0xff]   ;;  %v2994_v11 = vld [vmem:[%s4372_s6 + $0x120] sm:$0xff]  }
 0x15b   :  { %v899_v56 = vpop.f32.mrf.mxu0  ;;  %2814 = vmatprep.subr.bf16.mxu0 %v2985_v15  ;;  %v1012_v3 = vpop.f32.mrf.mxu1  ;;  %2878 = vmatprep.subr.bf16.mxu1 %v2987_v12  ;;  %v2990_v37 = vld [vmem:[%s4372_s6 + $0x128] sm:$0xff]   ;;  %v2997_v12 = vld [vmem:[%s4372_s6 + $0x158] sm:$0xff]  }
 0x15c   :  { %v1326_v5 = vmul.f32 %v899_v56, %v3556_v38  ;;  %v1328_v1 = vmul.f32 %v1012_v3, %v3561_v40  ;;  %v1437_v38 = vpack.c.bf16 %v1325_v54, %v1317_v62  ;;  %v1439_v33 = vpack.c.bf16 %v1327_v59, %v1319_v6  ;;  %v3003_v62 = vld [vmem:[%s4372_s6 + $0x1d0] sm:$0xff]  }
 0x15d   :  { %v903_v8 = vpop.f32.mrf.mxu0  ;;  %v1016_v13 = vpop.f32.mrf.mxu1 }
 0x15e   :  { %v1438_v31 = vpack.c.bf16 %v1326_v5, %v1318_v57  ;;  %2815 = vmatpush3.bf16.msra.mxu0 %v2986_v50  ;;  %v1440_v20 = vpack.c.bf16 %v1328_v1, %v1320_v0  ;;  %2879 = vmatpush3.bf16.msra.mxu1 %v2988_v2  ;;  %v1333_v56 = vmul.f32 %v903_v8, %v3569_v43  ;;  %v3000_v43 = vld [vmem:[%s4372_s6 + $0x198] sm:$0xff]   ;;  %v3002_v8 = vld [vmem:[%s4372_s6 + $0x110] sm:$0xff]  }
 0x15f   :  { %v905_v22 = vpop.f32.mrf.mxu0  ;;  %2816 = vmatprep.subr.bf16.mxu0 %v2989_v44  ;;  %v1018_v40 = vpop.f32.mrf.mxu1  ;;  %2880 = vmatprep.subr.bf16.mxu1 %v2991_v17  ;;  %v1335_v59 = vmul.f32 %v1016_v13, %v3576_v45  ;;  %v3001_v45 = vld [vmem:[%s4372_s6 + $0x150] sm:$0xff]  }
 0x160   :  { %2045 = vmatprep.mubr.bf16.mxu0 %v1438_v31  ;;  %2142 = vmatprep.mubr.bf16.mxu1 %v1440_v20  ;;  %v1334_v4 = vmul.f32 %v905_v22, %v3581_v46  ;;  %v1336_v2 = vmul.f32 %v1018_v40, %v3587_v48  ;;  %v3004_v13 = vld [vmem:[%s4372_s6 + $0x190] sm:$0xff]  }
 0x161   :  { %v907_v51 = vpop.f32.mrf.mxu0  ;;  %2046 = vmatmul.mubr.bf16.gmra.mxu0 %v1437_v38  ;;  %v1020_v47 = vpop.f32.mrf.mxu1  ;;  %2143 = vmatmul.mubr.bf16.gmra.mxu1 %v1439_v33 }
 0x162   :  { %2817 = vmatpush3.bf16.msra.mxu0 %v2990_v37  ;;  %v1341_v15 = vmul.f32 %v907_v51, %v3595_v35  ;;  %2881 = vmatpush3.bf16.msra.mxu1 %v2992_v28  ;;  %v1343_v49 = vmul.f32 %v1020_v47, %v3600_v52  ;;  %v2999_v35 = vld [vmem:[%s4372_s6 + $0x1d8] sm:$0xff]   ;;  %v3005_v37 = vld [vmem:[%s4372_s6 + $0x148] sm:$0xff]  }
 0x163   :  { %v909_v23 = vpop.f32.mrf.mxu0  ;;  %2818 = vmatprep.subr.bf16.mxu0 %v2993_v30  ;;  %v1022_v54 = vpop.f32.mrf.mxu1  ;;  %2882 = vmatprep.subr.bf16.mxu1 %v2995_v18  ;;  %v2998_v52 = vld [vmem:[%s4372_s6 + $0x118] sm:$0xff]  }
 0x164   :  { %v1342_v50 = vmul.f32 %v909_v23, %v3602_v53  ;;  %v1344_v44 = vmul.f32 %v1022_v54, %v3607_v55  ;;  %v1445_v53 = vpack.c.bf16 %v1341_v15, %v1333_v56  ;;  %v1447_v48 = vpack.c.bf16 %v1343_v49, %v1335_v59  ;;  %v3011_v23 = vld [vmem:[%s4372_s6 + $0x1c0] sm:$0xff]  }
 0x165   :  { %v913_v57 = vpop.f32.mrf.mxu0  ;;  %v1026_v5 = vpop.f32.mrf.mxu1  ;;  %v3012_v54 = vld [vmem:[%s4372_s6 + $0x180] sm:$0xff]  }
 0x166   :  { %v1446_v46 = vpack.c.bf16 %v1342_v50, %v1334_v4  ;;  %2819 = vmatpush3.bf16.msra.mxu0 %v2994_v11  ;;  %v1448_v3 = vpack.c.bf16 %v1344_v44, %v1336_v2  ;;  %2883 = vmatpush3.bf16.msra.mxu1 %v2996_v25  ;;  %v1349_v30 = vmul.f32 %v913_v57, %v3615_v58  ;;  %v3008_v58 = vld [vmem:[%s4372_s6 + $0x188] sm:$0xff]   ;;  %v3010_v4 = vld [vmem:[%s4372_s6 + $0x100] sm:$0xff]  }
 0x167   :  { %v915_v17 = vpop.f32.mrf.mxu0  ;;  %2820 = vmatprep.subr.bf16.mxu0 %v2997_v12  ;;  %v1028_v55 = vpop.f32.mrf.mxu1  ;;  %2884 = vmatprep.subr.bf16.mxu1 %v2999_v35  ;;  %v1351_v51 = vmul.f32 %v1026_v5, %v3622_v60  ;;  %v3009_v60 = vld [vmem:[%s4372_s6 + $0x140] sm:$0xff]  }
 0x168   :  { %2053 = vmatprep.mubr.bf16.mxu0 %v1446_v46  ;;  %2150 = vmatprep.mubr.bf16.mxu1 %v1448_v3  ;;  %v1350_v38 = vmul.f32 %v915_v17, %v3627_v61  ;;  %v1352_v33 = vmul.f32 %v1028_v55, %v3633_v63 }
 0x169   :  { %v917_v0 = vpop.f32.mrf.mxu0  ;;  %2054 = vmatmul.mubr.bf16.gmra.mxu0 %v1445_v53  ;;  %v1030_v1 = vpop.f32.mrf.mxu1  ;;  %2151 = vmatmul.mubr.bf16.gmra.mxu1 %v1447_v48 }
 0x16a   :  { %2821 = vmatpush3.bf16.msra.mxu0 %v2998_v52  ;;  %v1357_v6 = vmul.f32 %v917_v0, %v3641_v7  ;;  %2885 = vmatpush3.bf16.msra.mxu1 %v3000_v43  ;;  %v1359_v20 = vmul.f32 %v1030_v1, %v3646_v9  ;;  %v3007_v7 = vld [vmem:[%s4372_s6 + $0x1c8] sm:$0xff]   ;;  %v4459_v0 = vld [vmem:[#allocation3_spill] sm:$0xff] }
 0x16b   :  { %v919_v31 = vpop.f32.mrf.mxu0  ;;  %2822 = vmatprep.subr.bf16.mxu0 %v3001_v45  ;;  %v1032_v28 = vpop.f32.mrf.mxu1  ;;  %2886 = vmatprep.subr.bf16.mxu1 %v3003_v62  ;;  %v3006_v9 = vld [vmem:[%s4372_s6 + $0x108] sm:$0xff]  }
 0x16c   :  { %v1358_v22 = vmul.f32 %v919_v31, %v3648_v10  ;;  %v1360_v40 = vmul.f32 %v1032_v28, %v3650_v14  ;;  %v1453_v10 = vpack.c.bf16 %v1357_v6, %v1349_v30  ;;  %v1455_v63 = vpack.c.bf16 %v1359_v20, %v1351_v51  ;;  %v4464_v51 = vld [vmem:[#allocation10_spill] sm:$0xff] }
 0x16d   :  { %v923_v18 = vpop.f32.mrf.mxu0  ;;  %v1036_v47 = vpop.f32.mrf.mxu1 }
 0x16e   :  { %v1454_v61 = vpack.c.bf16 %v1358_v22, %v1350_v38  ;;  %2823 = vmatpush3.bf16.msra.mxu0 %v3002_v8  ;;  %v1456_v11 = vpack.c.bf16 %v1360_v40, %v1352_v33  ;;  %2887 = vmatpush3.bf16.msra.mxu1 %v3004_v13  ;;  %v1365_v57 = vmul.f32 %v923_v18, %v3652_v16  ;;  %v4460_v8 = vld [vmem:[#allocation4_spill] sm:$0xff]  ;;  %v4461_v13 = vld [vmem:[#allocation2_spill] sm:$0xff]  ;;  %v4463_v40 = vld [vmem:[#allocation7_spill] sm:$0xff] }
 0x16f   :  { %v925_v15 = vpop.f32.mrf.mxu0  ;;  %2824 = vmatprep.subr.bf16.mxu0 %v3005_v37  ;;  %v1038_v14 = vpop.f32.mrf.mxu1  ;;  %2888 = vmatprep.subr.bf16.mxu1 %v3007_v7  ;;  %v1367_v5 = vmul.f32 %v1036_v47, %v3656_v19  ;;  %v4465_v47 = vld [vmem:[#allocation11_spill] sm:$0xff] }
 0x170   :  { %2061 = vmatprep.mubr.bf16.mxu0 %v1454_v61  ;;  %2158 = vmatprep.mubr.bf16.mxu1 %v1456_v11  ;;  %v1366_v35 = vmul.f32 %v925_v15, %v3661_v21  ;;  %v1368_v59 = vmul.f32 %v1038_v14, %v3664_v24  ;;  %v4466_v11 = vld [vmem:[#allocation5_spill] sm:$0xff] }
 0x171   :  { %v927_v25 = vpop.f32.mrf.mxu0  ;;  %2062 = vmatmul.mubr.bf16.gmra.mxu0 %v1453_v10  ;;  %v1040_v12 = vpop.f32.mrf.mxu1  ;;  %2159 = vmatmul.mubr.bf16.gmra.mxu1 %v1455_v63  ;;  %v4468_v63 = vld [vmem:[#allocation12_spill] sm:$0xff] }
 0x172   :  { %2825 = vmatpush3.bf16.msra.mxu0 %v3006_v9  ;;  %v1373_v49 = vmul.f32 %v927_v25, %v3666_v26  ;;  %2889 = vmatpush3.bf16.msra.mxu1 %v3008_v58  ;;  %v1375_v56 = vmul.f32 %v1040_v12, %v3668_v27  ;;  %v4467_v58 = vld [vmem:[#allocation8_spill] sm:$0xff]  ;;  %v4469_v25 = vld [vmem:[#allocation6_spill] sm:$0xff] }
 0x173   :  { %v929_v50 = vpop.f32.mrf.mxu0  ;;  %2826 = vmatprep.subr.bf16.mxu0 %v3009_v60  ;;  %v1042_v44 = vpop.f32.mrf.mxu1  ;;  %2890 = vmatprep.subr.bf16.mxu1 %v3011_v23 }
 0x174   :  { %v1374_v2 = vmul.f32 %v929_v50, %v3670_v29  ;;  %v1376_v26 = vmul.f32 %v1042_v44, %v3672_v32  ;;  %v1461_v3 = vpack.c.bf16 %v1373_v49, %v1365_v57  ;;  %v1463_v27 = vpack.c.bf16 %v1375_v56, %v1367_v5  ;;  %v4471_v5 = vld [vmem:[#allocation15_spill] sm:$0xff] }
 0x175   :  { %v933_v46 = vpop.f32.mrf.mxu0  ;;  %v1046_v53 = vpop.f32.mrf.mxu1 }
 0x176   :  { %v1462_v52 = vpack.c.bf16 %v1374_v2, %v1366_v35  ;;  %2827 = vmatpush3.bf16.msra.mxu0 %v3010_v4  ;;  %v1464_v21 = vpack.c.bf16 %v1376_v26, %v1368_v59  ;;  %2891 = vmatpush3.bf16.msra.mxu1 %v3012_v54  ;;  %v1381_v62 = vmul.f32 %v933_v46, %v3674_v34  ;;  %v4462_v34 = vld [vmem:[#allocation9_spill] sm:$0xff] }
 0x177   :  { %v935_v17 = vpop.f32.mrf.mxu0  ;;  %v1048_v29 = vpop.f32.mrf.mxu1  ;;  %v1383_v37 = vmul.f32 %v1046_v53, %v4461_v13  ;;  %v4470_v59 = vld [vmem:[#allocation17_spill] sm:$0xff]  ;;  %v4472_v53 = vld [vmem:[#allocation18_spill] sm:$0xff] }
 0x178   :  { %2069 = vmatprep.mubr.bf16.mxu0 %v1462_v52  ;;  %2166 = vmatprep.mubr.bf16.mxu1 %v1464_v21  ;;  %v1382_v19 = vmul.f32 %v935_v17, %v3683_v36  ;;  %v1384_v1 = vmul.f32 %v1048_v29, %v4459_v0  ;;  %v4473_v21 = vld [vmem:[#allocation19_spill] sm:$0xff]  ;;  %v4474_v29 = vld [vmem:[#allocation13_spill] sm:$0xff] }
 0x179   :  { %v937_v43 = vpop.f32.mrf.mxu0  ;;  %2070 = vmatmul.mubr.bf16.gmra.mxu0 %v1461_v3  ;;  %v1050_v16 = vpop.f32.mrf.mxu1  ;;  %2167 = vmatmul.mubr.bf16.gmra.mxu1 %v1463_v27 }
 0x17a   :  { %v1389_v24 = vmul.f32 %v937_v43, %v3688_v39  ;;  %v1391_v45 = vmul.f32 %v1050_v16, %v3690_v41  ;;  %v4475_v16 = vld [vmem:[#allocation16_spill] sm:$0xff] }
 0x17b   :  { %v939_v32 = vpop.f32.mrf.mxu0  ;;  %v1052_v55 = vpop.f32.mrf.mxu1 }
 0x17c   :  { %v1390_v48 = vmul.f32 %v939_v32, %v3692_v42  ;;  %v1392_v6 = vmul.f32 %v1052_v55, %v4460_v8  ;;  %v1469_v39 = vpack.c.bf16 %v1389_v24, %v1381_v62  ;;  %v1471_v36 = vpack.c.bf16 %v1391_v45, %v1383_v37  ;;  %v4476_v32 = vld [vmem:[#allocation20_spill] sm:$0xff] }
 0x17d   :  { %v943_v31 = vpop.f32.mrf.mxu0  ;;  %v1056_v20 = vpop.f32.mrf.mxu1 }
 0x17e   :  { %v1470_v38 = vpack.c.bf16 %v1390_v48, %v1382_v19  ;;  %v1472_v22 = vpack.c.bf16 %v1392_v6, %v1384_v1  ;;  %v1397_v15 = vmul.f32 %v943_v31, %v4466_v11  ;;  %v1399_v12 = vmul.f32 %v1056_v20, %v4469_v25  ;;  %v4477_v48 = vld [vmem:[#allocation14_spill] sm:$0xff]  ;;  %v4478_v20 = vld [vmem:[#allocation25_spill] sm:$0xff] }
 0x17f   :  { %v945_v28 = vpop.f32.mrf.mxu0  ;;  %v1058_v7 = vpop.f32.mrf.mxu1 }
 0x180   :  { %2077 = vmatprep.mubr.bf16.mxu0 %v1470_v38  ;;  %2174 = vmatprep.mubr.bf16.mxu1 %v1472_v22  ;;  %v1398_v18 = vmul.f32 %v945_v28, %v4463_v40  ;;  %v1400_v60 = vmul.f32 %v1058_v7, %v4467_v58  ;;  %v4479_v28 = vld [vmem:[#allocation23_spill] sm:$0xff]  ;;  %v4480_v7 = vld [vmem:[#allocation26_spill] sm:$0xff] }
 0x181   :  { %v947_v41 = vpop.f32.mrf.mxu0  ;;  %2078 = vmatmul.mubr.bf16.gmra.mxu0 %v1469_v39  ;;  %v1060_v42 = vpop.f32.mrf.mxu1  ;;  %2175 = vmatmul.mubr.bf16.gmra.mxu1 %v1471_v36 }
 0x182   :  { %v1405_v30 = vmul.f32 %v947_v41, %v4462_v34  ;;  %v1407_v61 = vmul.f32 %v1060_v42, %v4464_v51  ;;  %v4481_v42 = vld [vmem:[#allocation27_spill] sm:$0xff] }
 0x183   :  { %v949_v33 = vpop.f32.mrf.mxu0  ;;  %v1062_v10 = vpop.f32.mrf.mxu1 }
 0x184   :  { %v1406_v9 = vmul.f32 %v949_v33, %v4465_v47  ;;  %v1408_v14 = vmul.f32 %v1062_v10, %v4468_v63  ;;  %v1477_v50 = vpack.c.bf16 %v1405_v30, %v1397_v15  ;;  %v1479_v56 = vpack.c.bf16 %v1407_v61, %v1399_v12  ;;  %v4482_v33 = vld [vmem:[#allocation21_spill] sm:$0xff]  ;;  %v4484_v61 = vld [vmem:[#allocation28_spill] sm:$0xff]  ;;  %v4485_v10 = vld [vmem:[#allocation22_spill] sm:$0xff] }
 0x185   :  { %v953_v23 = vpop.f32.mrf.mxu0  ;;  %v1066_v49 = vpop.f32.mrf.mxu1 }
 0x186   :  { %v1478_v4 = vpack.c.bf16 %v1406_v9, %v1398_v18  ;;  %v1480_v54 = vpack.c.bf16 %v1408_v14, %v1400_v60  ;;  %v1413_v43 = vmul.f32 %v953_v23, %v4474_v29  ;;  %v1415_v55 = vmul.f32 %v1066_v49, %v4477_v48  ;;  %v4483_v18 = vld [vmem:[#allocation24_spill] sm:$0xff]  ;;  %v4486_v49 = vld [vmem:[#allocation33_spill] sm:$0xff] }
 0x187   :  { %v955_v35 = vpop.f32.mrf.mxu0  ;;  %v1068_v2 = vpop.f32.mrf.mxu1 }
 0x188   :  { %2085 = vmatprep.mubr.bf16.mxu0 %v1478_v4  ;;  %2182 = vmatprep.mubr.bf16.mxu1 %v1480_v54  ;;  %v1414_v52 = vmul.f32 %v955_v35, %v4471_v5  ;;  %v1416_v24 = vmul.f32 %v1068_v2, %v4475_v16  ;;  %v4487_v35 = vld [vmem:[#allocation31_spill] sm:$0xff]  ;;  %v4488_v2 = vld [vmem:[#allocation34_spill] sm:$0xff] }
 0x189   :  { %v957_v44 = vpop.f32.mrf.mxu0  ;;  %2086 = vmatmul.mubr.bf16.gmra.mxu0 %v1477_v50  ;;  %v1070_v57 = vpop.f32.mrf.mxu1  ;;  %2183 = vmatmul.mubr.bf16.gmra.mxu1 %v1479_v56 }
 0x18a   :  { %v1421_v26 = vmul.f32 %v957_v44, %v4470_v59  ;;  %v1423_v3 = vmul.f32 %v1070_v57, %v4472_v53  ;;  %v4489_v57 = vld [vmem:[#allocation35_spill] sm:$0xff] }
 0x18b   :  { %v959_v46 = vpop.f32.mrf.mxu0  ;;  %v1072_v27 = vpop.f32.mrf.mxu1 }
 0x18c   :  { %v1422_v17 = vmul.f32 %v959_v46, %v4473_v21  ;;  %v1424_v19 = vmul.f32 %v1072_v27, %v4476_v32  ;;  %v1485_v1 = vpack.c.bf16 %v1421_v26, %v1413_v43  ;;  %v1487_v31 = vpack.c.bf16 %v1423_v3, %v1415_v55  ;;  %v4490_v46 = vld [vmem:[#allocation29_spill] sm:$0xff]  ;;  %v4492_v3 = vld [vmem:[#allocation36_spill] sm:$0xff]  ;;  %v4493_v27 = vld [vmem:[#allocation30_spill] sm:$0xff] }
 0x18d   :  { %v1109_v45 = vpop.f32.mrf.mxu0  ;;  %v1222_v0 = vpop.f32.mrf.mxu1 }
 0x18e   :  { %v1486_v62 = vpack.c.bf16 %v1422_v17, %v1414_v52  ;;  %v1488_v8 = vpack.c.bf16 %v1424_v19, %v1416_v24  ;;  %v1305_v40 = vmul.f32 %v1109_v45, %v4482_v33  ;;  %v1307_v11 = vmul.f32 %v1222_v0, %v4485_v10  ;;  %v4491_v52 = vld [vmem:[#allocation32_spill] sm:$0xff]  ;;  %v4494_v0 = vld [vmem:[#allocation41_spill] sm:$0xff] }
 0x18f   :  { %v1111_v6 = vpop.f32.mrf.mxu0  ;;  %v1224_v13 = vpop.f32.mrf.mxu1 }
 0x190   :  { %2093 = vmatprep.mubr.bf16.mxu0 %v1486_v62  ;;  %2190 = vmatprep.mubr.bf16.mxu1 %v1488_v8  ;;  %v1306_v36 = vmul.f32 %v1111_v6, %v4479_v28  ;;  %v1308_v51 = vmul.f32 %v1224_v13, %v4483_v18  ;;  %v4495_v6 = vld [vmem:[#allocation39_spill] sm:$0xff]  ;;  %v4496_v13 = vld [vmem:[#allocation42_spill] sm:$0xff] }
 0x191   :  { %v1113_v37 = vpop.f32.mrf.mxu0  ;;  %2094 = vmatmul.mubr.bf16.gmra.mxu0 %v1485_v1  ;;  %v1226_v38 = vpop.f32.mrf.mxu1  ;;  %2191 = vmatmul.mubr.bf16.gmra.mxu1 %v1487_v31 }
 0x192   :  { %v1313_v39 = vmul.f32 %v1113_v37, %v4478_v20  ;;  %v1315_v41 = vmul.f32 %v1226_v38, %v4480_v7  ;;  %v4497_v38 = vld [vmem:[#allocation43_spill] sm:$0xff] }
 0x193   :  { %v1115_v22 = vpop.f32.mrf.mxu0  ;;  %v1228_v30 = vpop.f32.mrf.mxu1 }
 0x194   :  { %v1314_v34 = vmul.f32 %v1115_v22, %v4481_v42  ;;  %v1316_v47 = vmul.f32 %v1228_v30, %v4484_v61  ;;  %v1433_v60 = vpack.c.bf16 %v1313_v39, %v1305_v40  ;;  %v1435_v23 = vpack.c.bf16 %v1315_v41, %v1307_v11  ;;  %v4498_v22 = vld [vmem:[#allocation37_spill] sm:$0xff]  ;;  %v4500_v41 = vld [vmem:[#allocation44_spill] sm:$0xff]  ;;  %v4501_v30 = vld [vmem:[#allocation38_spill] sm:$0xff] }
 0x195   :  { %v1119_v9 = vpop.f32.mrf.mxu0  ;;  %v1232_v58 = vpop.f32.mrf.mxu1 }
 0x196   :  { %v1434_v15 = vpack.c.bf16 %v1314_v34, %v1306_v36  ;;  %v1436_v63 = vpack.c.bf16 %v1316_v47, %v1308_v51  ;;  %v1321_v5 = vmul.f32 %v1119_v9, %v4490_v46  ;;  %v1323_v29 = vmul.f32 %v1232_v58, %v4493_v27  ;;  %v4499_v36 = vld [vmem:[#allocation40_spill] sm:$0xff]  ;;  %v4502_v58 = vld [vmem:[#allocation49_spill] sm:$0xff] }
 0x197   :  { %v1121_v14 = vpop.f32.mrf.mxu0  ;;  %v1234_v25 = vpop.f32.mrf.mxu1 }
 0x198   :  { %2231 = vmatprep.mubr.bf16.mxu0 %v1434_v15  ;;  %2328 = vmatprep.mubr.bf16.mxu1 %v1436_v63  ;;  %v1322_v56 = vmul.f32 %v1121_v14, %v4487_v35  ;;  %v1324_v53 = vmul.f32 %v1234_v25, %v4491_v52  ;;  %v4503_v14 = vld [vmem:[#allocation47_spill] sm:$0xff]  ;;  %v4504_v25 = vld [vmem:[#allocation50_spill] sm:$0xff] }
 0x199   :  { %v1123_v12 = vpop.f32.mrf.mxu0  ;;  %2232 = vmatmul.mubr.bf16.vlgmr.msra.gmra.mxu0 %v1433_v60  ;;  %v1236_v4 = vpop.f32.mrf.mxu1  ;;  %2329 = vmatmul.mubr.bf16.vlgmr.msra.gmra.mxu1 %v1435_v23 }
 0x19a   :  { %v1329_v50 = vmul.f32 %v1123_v12, %v4486_v49  ;;  %v1331_v44 = vmul.f32 %v1236_v4, %v4488_v2  ;;  %v4505_v4 = vld [vmem:[#allocation51_spill] sm:$0xff] }
 0x19b   :  { %v1125_v54 = vpop.f32.mrf.mxu0  ;;  %v1238_v26 = vpop.f32.mrf.mxu1 }
 0x19c   :  { %v1330_v59 = vmul.f32 %v1125_v54, %v4489_v57  ;;  %v1332_v21 = vmul.f32 %v1238_v26, %v4492_v3  ;;  %v1441_v24 = vpack.c.bf16 %v1329_v50, %v1321_v5  ;;  %v1443_v45 = vpack.c.bf16 %v1331_v44, %v1323_v29  ;;  %v4506_v54 = vld [vmem:[#allocation45_spill] sm:$0xff]  ;;  %v4508_v44 = vld [vmem:[#allocation52_spill] sm:$0xff]  ;;  %v4509_v26 = vld [vmem:[#allocation46_spill] sm:$0xff] }
 0x19d   :  { %v1129_v17 = vpop.f32.mrf.mxu0  ;;  %v1242_v16 = vpop.f32.mrf.mxu1 }
 0x19e   :  { %v1442_v43 = vpack.c.bf16 %v1330_v59, %v1322_v56  ;;  %v1444_v32 = vpack.c.bf16 %v1332_v21, %v1324_v53  ;;  %v1337_v28 = vmul.f32 %v1129_v17, %v4498_v22  ;;  %v1339_v33 = vmul.f32 %v1242_v16, %v4501_v30  ;;  %v4507_v56 = vld [vmem:[#allocation48_spill] sm:$0xff]  ;;  %v4510_v16 = vld [vmem:[#allocation57_spill] sm:$0xff] }
 0x19f   :  { %v1131_v19 = vpop.f32.mrf.mxu0  ;;  %v1244_v48 = vpop.f32.mrf.mxu1 }
 0x1a0   :  { %2239 = vmatprep.mubr.bf16.mxu0 %v1442_v43  ;;  %2336 = vmatprep.mubr.bf16.mxu1 %v1444_v32  ;;  %v1338_v31 = vmul.f32 %v1131_v19, %v4495_v6  ;;  %v1340_v7 = vmul.f32 %v1244_v48, %v4499_v36  ;;  %v4511_v19 = vld [vmem:[#allocation55_spill] sm:$0xff]  ;;  %v4512_v48 = vld [vmem:[#allocation58_spill] sm:$0xff] }
 0x1a1   :  { %v1133_v55 = vpop.f32.mrf.mxu0  ;;  %2240 = vmatmul.mubr.bf16.gmra.mxu0 %v1441_v24  ;;  %v1246_v62 = vpop.f32.mrf.mxu1  ;;  %2337 = vmatmul.mubr.bf16.gmra.mxu1 %v1443_v45 }
 0x1a2   :  { %v1345_v1 = vmul.f32 %v1133_v55, %v4494_v0  ;;  %v1347_v37 = vmul.f32 %v1246_v62, %v4496_v13  ;;  %v4513_v62 = vld [vmem:[#allocation59_spill] sm:$0xff] }
 0x1a3   :  { %v1135_v8 = vpop.f32.mrf.mxu0  ;;  %v1248_v39 = vpop.f32.mrf.mxu1 }
 0x1a4   :  { %v1346_v20 = vmul.f32 %v1135_v8, %v4497_v38  ;;  %v1348_v42 = vmul.f32 %v1248_v39, %v4500_v41  ;;  %v1449_v51 = vpack.c.bf16 %v1345_v1, %v1337_v28  ;;  %v1451_v9 = vpack.c.bf16 %v1347_v37, %v1339_v33  ;;  %v4514_v8 = vld [vmem:[#allocation53_spill] sm:$0xff]  ;;  %v4516_v37 = vld [vmem:[#allocation60_spill] sm:$0xff]  ;;  %v4517_v39 = vld [vmem:[#allocation54_spill] sm:$0xff] }
 0x1a5   :  { %v1139_v34 = vpop.f32.mrf.mxu0  ;;  %v1252_v18 = vpop.f32.mrf.mxu1 }
 0x1a6   :  { %v1450_v40 = vpack.c.bf16 %v1346_v20, %v1338_v31  ;;  %v1452_v61 = vpack.c.bf16 %v1348_v42, %v1340_v7  ;;  %v1353_v35 = vmul.f32 %v1139_v34, %v4506_v54  ;;  %v1355_v46 = vmul.f32 %v1252_v18, %v4509_v26  ;;  %v4515_v31 = vld [vmem:[#allocation56_spill] sm:$0xff]  ;;  %v4518_v18 = vld [vmem:[#allocation65_spill] sm:$0xff] }
 0x1a7   :  { %v1141_v47 = vpop.f32.mrf.mxu0  ;;  %v1254_v10 = vpop.f32.mrf.mxu1 }
 0x1a8   :  { %2247 = vmatprep.mubr.bf16.mxu0 %v1450_v40  ;;  %2344 = vmatprep.mubr.bf16.mxu1 %v1452_v61  ;;  %v1354_v23 = vmul.f32 %v1141_v47, %v4503_v14  ;;  %v1356_v2 = vmul.f32 %v1254_v10, %v4507_v56  ;;  %v4519_v47 = vld [vmem:[#allocation63_spill] sm:$0xff]  ;;  %v4520_v10 = vld [vmem:[#allocation66_spill] sm:$0xff] }
 0x1a9   :  { %v1143_v11 = vpop.f32.mrf.mxu0  ;;  %2248 = vmatmul.mubr.bf16.gmra.mxu0 %v1449_v51  ;;  %v1256_v15 = vpop.f32.mrf.mxu1  ;;  %2345 = vmatmul.mubr.bf16.gmra.mxu1 %v1451_v9 }
 0x1aa   :  { %v1361_v60 = vmul.f32 %v1143_v11, %v4502_v58  ;;  %v1363_v12 = vmul.f32 %v1256_v15, %v4504_v25  ;;  %v4521_v15 = vld [vmem:[#allocation67_spill] sm:$0xff] }
 0x1ab   :  { %v1145_v63 = vpop.f32.mrf.mxu0  ;;  %v1258_v50 = vpop.f32.mrf.mxu1 }
 0x1ac   :  { %v1362_v49 = vmul.f32 %v1145_v63, %v4505_v4  ;;  %v1364_v57 = vmul.f32 %v1258_v50, %v4508_v44  ;;  %v1457_v53 = vpack.c.bf16 %v1361_v60, %v1353_v35  ;;  %v1459_v17 = vpack.c.bf16 %v1363_v12, %v1355_v46  ;;  %v4522_v63 = vld [vmem:[#allocation61_spill] sm:$0xff]  ;;  %v4524_v12 = vld [vmem:[#allocation68_spill] sm:$0xff]  ;;  %v4525_v50 = vld [vmem:[#allocation62_spill] sm:$0xff] }
 0x1ad   :  { %v1149_v59 = vpop.f32.mrf.mxu0  ;;  %v1262_v52 = vpop.f32.mrf.mxu1 }
 0x1ae   :  { %v1458_v5 = vpack.c.bf16 %v1362_v49, %v1354_v23  ;;  %v1460_v3 = vpack.c.bf16 %v1364_v57, %v1356_v2  ;;  %v1369_v6 = vmul.f32 %v1149_v59, %v4514_v8  ;;  %v1371_v22 = vmul.f32 %v1262_v52, %v4517_v39  ;;  %v4523_v23 = vld [vmem:[#allocation64_spill] sm:$0xff]  ;;  %v4526_v52 = vld [vmem:[#allocation73_spill] sm:$0xff] }
 0x1af   :  { %v1151_v21 = vpop.f32.mrf.mxu0  ;;  %v1264_v27 = vpop.f32.mrf.mxu1 }
 0x1b0   :  { %2255 = vmatprep.mubr.bf16.mxu0 %v1458_v5  ;;  %2352 = vmatprep.mubr.bf16.mxu1 %v1460_v3  ;;  %v1370_v45 = vmul.f32 %v1151_v21, %v4511_v19  ;;  %v1372_v13 = vmul.f32 %v1264_v27, %v4515_v31  ;;  %v4527_v21 = vld [vmem:[#allocation71_spill] sm:$0xff]  ;;  %v4528_v27 = vld [vmem:[#allocation74_spill] sm:$0xff] }
 0x1b1   :  { %v1153_v29 = vpop.f32.mrf.mxu0  ;;  %2256 = vmatmul.mubr.bf16.gmra.mxu0 %v1457_v53  ;;  %v1266_v43 = vpop.f32.mrf.mxu1  ;;  %2353 = vmatmul.mubr.bf16.gmra.mxu1 %v1459_v17 }
 0x1b2   :  { %v1377_v24 = vmul.f32 %v1153_v29, %v4510_v16  ;;  %v1379_v55 = vmul.f32 %v1266_v43, %v4512_v48  ;;  %v4529_v43 = vld [vmem:[#allocation75_spill] sm:$0xff] }
 0x1b3   :  { %v1155_v32 = vpop.f32.mrf.mxu0  ;;  %v1268_v1 = vpop.f32.mrf.mxu1 }
 0x1b4   :  { %v1378_v0 = vmul.f32 %v1155_v32, %v4513_v62  ;;  %v1380_v38 = vmul.f32 %v1268_v1, %v4516_v37  ;;  %v1465_v7 = vpack.c.bf16 %v1377_v24, %v1369_v6  ;;  %v1467_v34 = vpack.c.bf16 %v1379_v55, %v1371_v22  ;;  %v4530_v32 = vld [vmem:[#allocation69_spill] sm:$0xff]  ;;  %v4532_v55 = vld [vmem:[#allocation76_spill] sm:$0xff]  ;;  %v4533_v1 = vld [vmem:[#allocation70_spill] sm:$0xff] }
 0x1b5   :  { %v1159_v20 = vpop.f32.mrf.mxu0  ;;  %v1272_v36 = vpop.f32.mrf.mxu1 }
 0x1b6   :  { %v1466_v28 = vpack.c.bf16 %v1378_v0, %v1370_v45  ;;  %v1468_v41 = vpack.c.bf16 %v1380_v38, %v1372_v13  ;;  %v1385_v14 = vmul.f32 %v1159_v20, %v4522_v63  ;;  %v1387_v54 = vmul.f32 %v1272_v36, %v4525_v50  ;;  %v4531_v45 = vld [vmem:[#allocation72_spill] sm:$0xff]  ;;  %v4534_v36 = vld [vmem:[#allocation81_spill] sm:$0xff] }
 0x1b7   :  { %v1161_v42 = vpop.f32.mrf.mxu0  ;;  %v1274_v30 = vpop.f32.mrf.mxu1 }
 0x1b8   :  { %2263 = vmatprep.mubr.bf16.mxu0 %v1466_v28  ;;  %2360 = vmatprep.mubr.bf16.mxu1 %v1468_v41  ;;  %v1386_v9 = vmul.f32 %v1161_v42, %v4519_v47  ;;  %v1388_v25 = vmul.f32 %v1274_v30, %v4523_v23  ;;  %v4535_v42 = vld [vmem:[#allocation79_spill] sm:$0xff]  ;;  %v4536_v30 = vld [vmem:[#allocation82_spill] sm:$0xff] }
 0x1b9   :  { %v1163_v33 = vpop.f32.mrf.mxu0  ;;  %2264 = vmatmul.mubr.bf16.gmra.mxu0 %v1465_v7  ;;  %v1276_v40 = vpop.f32.mrf.mxu1  ;;  %2361 = vmatmul.mubr.bf16.gmra.mxu1 %v1467_v34 }
 0x1ba   :  { %v1393_v51 = vmul.f32 %v1163_v33, %v4518_v18  ;;  %v1395_v11 = vmul.f32 %v1276_v40, %v4520_v10  ;;  %v4537_v40 = vld [vmem:[#allocation83_spill] sm:$0xff] }
 0x1bb   :  { %v1165_v61 = vpop.f32.mrf.mxu0  ;;  %v1278_v60 = vpop.f32.mrf.mxu1 }
 0x1bc   :  { %v1394_v58 = vmul.f32 %v1165_v61, %v4521_v15  ;;  %v1396_v4 = vmul.f32 %v1278_v60, %v4524_v12  ;;  %v1473_v2 = vpack.c.bf16 %v1393_v51, %v1385_v14  ;;  %v1475_v59 = vpack.c.bf16 %v1395_v11, %v1387_v54  ;;  %v4538_v61 = vld [vmem:[#allocation77_spill] sm:$0xff]  ;;  %v4540_v11 = vld [vmem:[#allocation84_spill] sm:$0xff] }
 0x1bd   :  { %v1169_v49 = vpop.f32.mrf.mxu0  ;;  %v1282_v56 = vpop.f32.mrf.mxu1 }
 0x1be   :  { %v1474_v35 = vpack.c.bf16 %v1394_v58, %v1386_v9  ;;  %v1476_v44 = vpack.c.bf16 %v1396_v4, %v1388_v25  ;;  %v1401_v19 = vmul.f32 %v1169_v49, %v4530_v32  ;;  %v1403_v8 = vmul.f32 %v1282_v56, %v4533_v1  ;;  %v4539_v9 = vld [vmem:[#allocation80_spill] sm:$0xff]  ;;  %v4541_v58 = vld [vmem:[#allocation78_spill] sm:$0xff] }
 0x1bf   :  { %v1171_v57 = vpop.f32.mrf.mxu0  ;;  %v1284_v26 = vpop.f32.mrf.mxu1 }
 0x1c0   :  { %2271 = vmatprep.mubr.bf16.mxu0 %v1474_v35  ;;  %2368 = vmatprep.mubr.bf16.mxu1 %v1476_v44  ;;  %v1402_v17 = vmul.f32 %v1171_v57, %v4527_v21  ;;  %v1404_v48 = vmul.f32 %v1284_v26, %v4531_v45 }
 0x1c1   :  { %v1173_v46 = vpop.f32.mrf.mxu0  ;;  %2272 = vmatmul.mubr.bf16.gmra.mxu0 %v1473_v2  ;;  %v1286_v5 = vpop.f32.mrf.mxu1  ;;  %2369 = vmatmul.mubr.bf16.gmra.mxu1 %v1475_v59 }
 0x1c2   :  { %v1409_v53 = vmul.f32 %v1173_v46, %v4526_v52  ;;  %v1411_v29 = vmul.f32 %v1286_v5, %v4528_v27 }
 0x1c3   :  { %v1175_v3 = vpop.f32.mrf.mxu0  ;;  %v1288_v24 = vpop.f32.mrf.mxu1 }
 0x1c4   :  { %v1410_v16 = vmul.f32 %v1175_v3, %v4529_v43  ;;  %v1412_v62 = vmul.f32 %v1288_v24, %v4532_v55  ;;  %v1481_v13 = vpack.c.bf16 %v1409_v53, %v1401_v19  ;;  %v1483_v20 = vpack.c.bf16 %v1411_v29, %v1403_v8 }
 0x1c5   :  { %v1179_v0 = vpop.f32.mrf.mxu0  ;;  %v1292_v31 = vpop.f32.mrf.mxu1 }
 0x1c6   :  { %v1482_v6 = vpack.c.bf16 %v1410_v16, %v1402_v17  ;;  %v1484_v37 = vpack.c.bf16 %v1412_v62, %v1404_v48  ;;  %v1417_v47 = vmul.f32 %v1179_v0, %v4538_v61  ;;  %v1419_v60 = vmul.f32 %v1292_v31, %v4541_v58 }
 0x1c7   :  { %v1181_v38 = vpop.f32.mrf.mxu0  ;;  %v1294_v39 = vpop.f32.mrf.mxu1 }
 0x1c8   :  { %2279 = vmatprep.mubr.bf16.mxu0 %v1482_v6  ;;  %2376 = vmatprep.mubr.bf16.mxu1 %v1484_v37  ;;  %v1418_v34 = vmul.f32 %v1181_v38, %v4535_v42  ;;  %v1420_v10 = vmul.f32 %v1294_v39, %v4539_v9 }
 0x1c9   :  { %v1183_v22 = vpop.f32.mrf.mxu0  ;;  %2280 = vmatmul.mubr.bf16.gmra.mxu0 %v1481_v13  ;;  %v1296_v28 = vpop.f32.mrf.mxu1  ;;  %2377 = vmatmul.mubr.bf16.gmra.mxu1 %v1483_v20 }
 0x1ca   :  { %v1425_v7 = vmul.f32 %v1183_v22, %v4534_v36  ;;  %v1427_v33 = vmul.f32 %v1296_v28, %v4536_v30 }
 0x1cb   :  { %v1185_v41 = vpop.f32.mrf.mxu0  ;;  %v1298_v51 = vpop.f32.mrf.mxu1 }
 0x1cc   :  { %v1426_v18 = vmul.f32 %v1185_v41, %v4537_v40  ;;  %v1428_v15 = vmul.f32 %v1298_v51, %v4540_v11  ;;  %v1489_v14 = vpack.c.bf16 %v1425_v7, %v1417_v47  ;;  %v1491_v25 = vpack.c.bf16 %v1427_v33, %v1419_v60 }
 0x1ce   :  { %v1490_v63 = vpack.c.bf16 %v1426_v18, %v1418_v34  ;;  %v1492_v23 = vpack.c.bf16 %v1428_v15, %v1420_v10 }
 0x1d0   :  { %2287 = vmatprep.mubr.bf16.mxu0 %v1490_v63  ;;  %2384 = vmatprep.mubr.bf16.mxu1 %v1492_v23 }
 0x1d1   :  { %2288 = vmatmul.mubr.bf16.gmra.mxu0 %v1489_v14  ;;  %2385 = vmatmul.mubr.bf16.gmra.mxu1 %v1491_v25 }
 0x219   :  { %v4084_v12 = vpop.f32.mrf.mxu0  ;;  %v4086_v4 = vpop.f32.mrf.mxu1 }
 0x21b   :  { %v2701_v49 = vpop.f32.mrf.mxu0  ;;  %v2765_v50 = vpop.f32.mrf.mxu1 }
 0x21c   :  { %v2702_v25 = vadd.f32 %v2701_v49, %v4084_v12 }
 0x21d   :  { %v4088_v54 = vpop.f32.mrf.mxu0  ;;  %v4090_v35 = vpop.f32.mrf.mxu1 }
 0x21f   :  { %v2704_v56 = vpop.f32.mrf.mxu0  ;;  %v2768_v2 = vpop.f32.mrf.mxu1 }
 0x221   :  { %v4092_v44 = vpop.f32.mrf.mxu0  ;;  %v4094_v57 = vpop.f32.mrf.mxu1 }
 0x223   :  { %v4096_v59 = vpop.f32.mrf.mxu0  ;;  %v4098_v26 = vpop.f32.mrf.mxu1 }
 0x224   :  { %v2772_v49 = vadd.f32 %v4098_v26, %v4094_v57 }
 0x225   :  { %v4100_v46 = vpop.f32.mrf.mxu0  ;;  %v4102_v5 = vpop.f32.mrf.mxu1 }
 0x227   :  { %v4104_v52 = vpop.f32.mrf.mxu0  ;;  %v4106_v53 = vpop.f32.mrf.mxu1 }
 0x229   :  { %v4108_v3 = vpop.f32.mrf.mxu0  ;;  %v4110_v21 = vpop.f32.mrf.mxu1 }
 0x22b   :  { %v4112_v17 = vpop.f32.mrf.mxu0  ;;  %v4114_v27 = vpop.f32.mrf.mxu1 }
 0x22d   :  { %v4116_v29 = vpop.f32.mrf.mxu0  ;;  %v4118_v43 = vpop.f32.mrf.mxu1 }
 0x22f   :  { %v4120_v16 = vpop.f32.mrf.mxu0  ;;  %v4122_v24 = vpop.f32.mrf.mxu1 }
 0x231   :  { %v4124_v32 = vpop.f32.mrf.mxu0  ;;  %v4126_v19 = vpop.f32.mrf.mxu1 }
 0x233   :  { %v4128_v45 = vpop.f32.mrf.mxu0  ;;  %v4130_v48 = vpop.f32.mrf.mxu1 }
 0x235   :  { %v4132_v55 = vpop.f32.mrf.mxu0  ;;  %v4134_v62 = vpop.f32.mrf.mxu1 }
 0x237   :  { %v4136_v0 = vpop.f32.mrf.mxu0  ;;  %v4138_v1 = vpop.f32.mrf.mxu1 }
 0x239   :  { %v4140_v8 = vpop.f32.mrf.mxu0  ;;  %v4142_v6 = vpop.f32.mrf.mxu1 }
 0x23b   :  { %v4144_v31 = vpop.f32.mrf.mxu0  ;;  %v4146_v13 = vpop.f32.mrf.mxu1 }
 0x23d   :  { %v4148_v37 = vpop.f32.mrf.mxu0  ;;  %v4150_v38 = vpop.f32.mrf.mxu1 }
 0x23f   :  { %v4152_v20 = vpop.f32.mrf.mxu0  ;;  %v4154_v39 = vpop.f32.mrf.mxu1 }
 0x241   :  { %v4156_v22 = vpop.f32.mrf.mxu0  ;;  %v4158_v28 = vpop.f32.mrf.mxu1 }
 0x243   :  { %v4160_v36 = vpop.f32.mrf.mxu0  ;;  %v4162_v7 = vpop.f32.mrf.mxu1 }
 0x245   :  { %v4164_v41 = vpop.f32.mrf.mxu0  ;;  %v4166_v42 = vpop.f32.mrf.mxu1 }
 0x247   :  { %v4168_v34 = vpop.f32.mrf.mxu0  ;;  %v4170_v30 = vpop.f32.mrf.mxu1 }
 0x249   :  { %v4172_v33 = vpop.f32.mrf.mxu0  ;;  %v4174_v40 = vpop.f32.mrf.mxu1 }
 0x24a   :  { %4542 = vst [vmem:[#allocation3_spill] sm:$0xff] %v4172_v33  ;;  %4543 = vst [vmem:[#allocation4_spill] sm:$0xff] %v4174_v40 }
 0x24b   :  { %v4176_v18 = vpop.f32.mrf.mxu0  ;;  %v4178_v51 = vpop.f32.mrf.mxu1 }
 0x24c   :  { %4544 = vst [vmem:[#allocation2_spill] sm:$0xff] %v4176_v18  ;;  %4545 = vst [vmem:[#allocation9_spill] sm:$0xff] %v4178_v51 }
 0x24d   :  { %v4180_v61 = vpop.f32.mrf.mxu0  ;;  %v4182_v47 = vpop.f32.mrf.mxu1 }
 0x24e   :  { %4546 = vst [vmem:[#allocation7_spill] sm:$0xff] %v4180_v61  ;;  %4547 = vst [vmem:[#allocation10_spill] sm:$0xff] %v4182_v47  ;;  %v2766_v47 = vadd.f32 %v2765_v50, %v4086_v4  ;;  %v2708_v4 = vadd.f32 %v4096_v59, %v4092_v44  ;;  %v2775_v44 = vadd.f32 %v4106_v53, %v4102_v5 }
 0x24f   :  { %v4184_v9 = vpop.f32.mrf.mxu0  ;;  %v4186_v10 = vpop.f32.mrf.mxu1 }
 0x250   :  { %4548 = vst [vmem:[#allocation11_spill] sm:$0xff] %v4184_v9  ;;  %4549 = vst [vmem:[#allocation5_spill] sm:$0xff] %v4186_v10  ;;  %v2145_v57 = vadd.f32 %v2772_v49, %v2708_v4 }
 0x251   :  { %v4188_v11 = vpop.f32.mrf.mxu0  ;;  %v4190_v15 = vpop.f32.mrf.mxu1 }
 0x252   :  { %4550 = vst [vmem:[#allocation8_spill] sm:$0xff] %v4188_v11  ;;  %4551 = vst [vmem:[#allocation12_spill] sm:$0xff] %v4190_v15  ;;  %v2705_v15 = vadd.f32 %v2704_v56, %v4088_v54 }
 0x253   :  { %v4192_v58 = vpop.f32.mrf.mxu0  ;;  %v4194_v60 = vpop.f32.mrf.mxu1 }
 0x254   :  { %4552 = vst [vmem:[#allocation6_spill] sm:$0xff] %v4192_v58  ;;  %4553 = vst [vmem:[#allocation17_spill] sm:$0xff] %v4194_v60  ;;  %v2769_v58 = vadd.f32 %v2768_v2, %v4090_v35  ;;  %v2137_v60 = vadd.f32 %v2766_v47, %v2702_v25  ;;  %v2711_v47 = vadd.f32 %v4104_v52, %v4100_v46 }
 0x255   :  { %v4196_v63 = vpop.f32.mrf.mxu0  ;;  %v4198_v14 = vpop.f32.mrf.mxu1 }
 0x256   :  { %4554 = vst [vmem:[#allocation15_spill] sm:$0xff] %v4196_v63  ;;  %4555 = vst [vmem:[#allocation18_spill] sm:$0xff] %v4198_v14  ;;  %v2140_v33 = vadd.f32 %v2769_v58, %v2705_v15  ;;  %v2148_v53 = vadd.f32 %v2775_v44, %v2711_v47  ;;  %v2781_v44 = vadd.f32 %v4122_v24, %v4118_v43 }
 0x257   :  { %v4200_v23 = vpop.f32.mrf.mxu0  ;;  %v4204_v9 = vpop.f32.mrf.mxu1  ;;  %v2720_v43 = vadd.f32 %v4128_v45, %v4124_v32  ;;  %v2784_v24 = vadd.f32 %v4130_v48, %v4126_v19 }
 0x258   :  { %4556 = vst [vmem:[#allocation19_spill] sm:$0xff] %v4200_v23 }
 0x259   :  { %v2828_v10 = vpop.f32.mrf.mxu0  ;;  %v2892_v11 = vpop.f32.mrf.mxu1 }
 0x25b   :  { %v2829_v61 = vpop.f32.mrf.mxu0  ;;  %v2893_v63 = vpop.f32.mrf.mxu1 }
 0x25c   :  { %v2830_v51 = vadd.f32 %v2829_v61, %v2828_v10  ;;  %v2894_v18 = vadd.f32 %v2893_v63, %v2892_v11  ;;  %v2778_v63 = vadd.f32 %v4114_v27, %v4110_v21 }
 0x25d   :  { %v2831_v40 = vpop.f32.mrf.mxu0  ;;  %v2895_v23 = vpop.f32.mrf.mxu1 }
 0x25e   :  { %v2234_v14 = vadd.f32 %v2830_v51, %v2137_v60  ;;  %v2714_v60 = vadd.f32 %v4112_v17, %v4108_v3 }
 0x25f   :  { %v2832_v12 = vpop.f32.mrf.mxu0  ;;  %v2896_v56 = vpop.f32.mrf.mxu1 }
 0x260   :  { %v2331_v50 = vadd.f32 %v2894_v18, %v2234_v14  ;;  %v2833_v54 = vadd.f32 %v2832_v12, %v2831_v40  ;;  %v2897_v51 = vadd.f32 %v2896_v56, %v2895_v23 }
 0x261   :  { %v2834_v35 = vpop.f32.mrf.mxu0  ;;  %v2898_v61 = vpop.f32.mrf.mxu1 }
 0x262   :  { %2393 = vst.msk [vmem:[%s4373_s7] sm:$0xff] %vm196_vm0, %v2331_v50  ;;  %v2237_v2 = vadd.f32 %v2833_v54, %v2140_v33  ;;  %v2448_v26 = vmul.f32 %v2331_v50, %v2331_v50  ;;  %v2409_v11 = vsel %vm196_vm0, %v2331_v50, 0.0 }
 0x263   :  { %v2835_v59 = vpop.f32.mrf.mxu0  ;;  %v2899_v10 = vpop.f32.mrf.mxu1 }
 0x264   :  { %v2334_v40 = vadd.f32 %v2897_v51, %v2237_v2  ;;  %v2836_v18 = vadd.f32 %v2835_v59, %v2834_v35  ;;  %v2900_v58 = vadd.f32 %v2899_v10, %v2898_v61  ;;  %v2464_v25 = vsel %vm196_vm0, %v2448_v26, 0.0 }
 0x265   :  { %v2837_v15 = vpop.f32.mrf.mxu0  ;;  %v2901_v5 = vpop.f32.mrf.mxu1  ;;  %v2153_v2 = vadd.f32 %v2778_v63, %v2714_v60  ;;  %v2717_v51 = vadd.f32 %v4120_v16, %v4116_v29 }
 0x266   :  { %2394 = vst.msk [vmem:[%s4373_s7 + $0x8] sm:$0xff] %vm196_vm0, %v2334_v40  ;;  %v2410_v33 = vsel %vm196_vm0, %v2334_v40, 0.0  ;;  %v2449_v46 = vmul.f32 %v2334_v40, %v2334_v40  ;;  %v2242_v52 = vadd.f32 %v2836_v18, %v2145_v57 }
 0x267   :  { %v2411_v14 = vadd.f32 %v2410_v33, %v2409_v11  ;;  %v2838_v23 = vpop.f32.mrf.mxu0  ;;  %v2902_v50 = vpop.f32.mrf.mxu1 }
 0x268   :  { %v2465_v12 = vsel %vm196_vm0, %v2449_v46, 0.0  ;;  %v2339_v4 = vadd.f32 %v2900_v58, %v2242_v52  ;;  %v2839_v49 = vadd.f32 %v2838_v23, %v2837_v15  ;;  %v2903_v27 = vadd.f32 %v2902_v50, %v2901_v5 }
 0x269   :  { %v2466_v54 = vadd.f32 %v2465_v12, %v2464_v25  ;;  %v2840_v56 = vpop.f32.mrf.mxu0  ;;  %v2904_v35 = vpop.f32.mrf.mxu1  ;;  %v2156_v58 = vadd.f32 %v2781_v44, %v2717_v51  ;;  %v2161_v12 = vadd.f32 %v2784_v24, %v2720_v43  ;;  %v2793_v24 = vadd.f32 %v4154_v39, %v4150_v38 }
 0x26a   :  { %2395 = vst.msk [vmem:[%s4373_s7 + $0x10] sm:$0xff] %vm196_vm0, %v2339_v4  ;;  %v2412_v3 = vsel %vm196_vm0, %v2339_v4, 0.0  ;;  %v2450_v17 = vmul.f32 %v2339_v4, %v2339_v4  ;;  %v2245_v21 = vadd.f32 %v2839_v49, %v2148_v53  ;;  %v2723_v4 = vadd.f32 %v4136_v0, %v4132_v55 }
 0x26b   :  { %v2413_v61 = vadd.f32 %v2412_v3, %v2411_v14  ;;  %v2841_v47 = vpop.f32.mrf.mxu0  ;;  %v2905_v40 = vpop.f32.mrf.mxu1  ;;  %v2732_v38 = vadd.f32 %v4160_v36, %v4156_v22  ;;  %v2796_v39 = vadd.f32 %v4162_v7, %v4158_v28 }
 0x26c   :  { %v2467_v59 = vsel %vm196_vm0, %v2450_v17, 0.0  ;;  %v2342_v57 = vadd.f32 %v2903_v27, %v2245_v21  ;;  %v2842_v26 = vadd.f32 %v2841_v47, %v2840_v56  ;;  %v2906_v15 = vadd.f32 %v2905_v40, %v2904_v35 }
 0x26d   :  { %v2468_v18 = vadd.f32 %v2467_v59, %v2466_v54  ;;  %v2843_v10 = vpop.f32.mrf.mxu0  ;;  %v2907_v33 = vpop.f32.mrf.mxu1  ;;  %v2787_v54 = vadd.f32 %v4138_v1, %v4134_v62  ;;  %v2726_v62 = vadd.f32 %v4144_v31, %v4140_v8  ;;  %v2790_v1 = vadd.f32 %v4146_v13, %v4142_v6 }
 0x26e   :  { %2396 = vst.msk [vmem:[%s4373_s7 + $0x18] sm:$0xff] %vm196_vm0, %v2342_v57  ;;  %v2414_v11 = vsel %vm196_vm0, %v2342_v57, 0.0  ;;  %v2451_v29 = vmul.f32 %v2342_v57, %v2342_v57  ;;  %v2250_v16 = vadd.f32 %v2842_v26, %v2153_v2 }
 0x26f   :  { %v2415_v46 = vadd.f32 %v2414_v11, %v2413_v61  ;;  %v2844_v52 = vpop.f32.mrf.mxu0  ;;  %v2908_v63 = vpop.f32.mrf.mxu1  ;;  %v2164_v59 = vadd.f32 %v2787_v54, %v2723_v4 }
 0x270   :  { %v2469_v5 = vsel %vm196_vm0, %v2451_v29, 0.0  ;;  %v2347_v53 = vadd.f32 %v2906_v15, %v2250_v16  ;;  %v2845_v60 = vadd.f32 %v2844_v52, %v2843_v10  ;;  %v2909_v19 = vadd.f32 %v2908_v63, %v2907_v33 }
 0x271   :  { %v2470_v14 = vadd.f32 %v2469_v5, %v2468_v18  ;;  %v2846_v23 = vpop.f32.mrf.mxu0  ;;  %v2910_v48 = vpop.f32.mrf.mxu1  ;;  %v2169_v16 = vadd.f32 %v2790_v1, %v2726_v62  ;;  %v2729_v15 = vadd.f32 %v4152_v20, %v4148_v37 }
 0x272   :  { %2397 = vst.msk [vmem:[%s4373_s7 + $0x20] sm:$0xff] %vm196_vm0, %v2347_v53  ;;  %v2416_v32 = vsel %vm196_vm0, %v2347_v53, 0.0  ;;  %v2452_v45 = vmul.f32 %v2347_v53, %v2347_v53  ;;  %v2253_v25 = vadd.f32 %v2845_v60, %v2156_v58 }
 0x273   :  { %v2417_v49 = vadd.f32 %v2416_v32, %v2415_v46  ;;  %v2847_v50 = vpop.f32.mrf.mxu0  ;;  %v2911_v21 = vpop.f32.mrf.mxu1 }
 0x274   :  { %v2471_v56 = vsel %vm196_vm0, %v2452_v45, 0.0  ;;  %v2350_v3 = vadd.f32 %v2909_v19, %v2253_v25  ;;  %v2848_v17 = vadd.f32 %v2847_v50, %v2846_v23  ;;  %v2912_v51 = vadd.f32 %v2911_v21, %v2910_v48 }
 0x275   :  { %v2472_v27 = vadd.f32 %v2471_v56, %v2470_v14  ;;  %v2849_v35 = vpop.f32.mrf.mxu0  ;;  %v2913_v61 = vpop.f32.mrf.mxu1  ;;  %v2172_v25 = vadd.f32 %v2793_v24, %v2729_v15  ;;  %v2177_v56 = vadd.f32 %v2796_v39, %v2732_v38 }
 0x276   :  { %2398 = vst.msk [vmem:[%s4373_s7 + $0x28] sm:$0xff] %vm196_vm0, %v2350_v3  ;;  %v2418_v2 = vsel %vm196_vm0, %v2350_v3, 0.0  ;;  %v2453_v55 = vmul.f32 %v2350_v3, %v2350_v3  ;;  %v2258_v0 = vadd.f32 %v2848_v17, %v2161_v12  ;;  %v2735_v3 = vadd.f32 %v4168_v34, %v4164_v41 }
 0x277   :  { %v2419_v47 = vadd.f32 %v2418_v2, %v2417_v49  ;;  %v2850_v44 = vpop.f32.mrf.mxu0  ;;  %v2914_v18 = vpop.f32.mrf.mxu1 }
 0x278   :  { %v2473_v57 = vsel %vm196_vm0, %v2453_v55, 0.0  ;;  %v2355_v26 = vadd.f32 %v2912_v51, %v2258_v0  ;;  %v2851_v40 = vadd.f32 %v2850_v44, %v2849_v35  ;;  %v2915_v6 = vadd.f32 %v2914_v18, %v2913_v61  ;;  %v4557_v44 = vld [vmem:[#allocation3_spill] sm:$0xff] }
 0x279   :  { %v2474_v10 = vadd.f32 %v2473_v57, %v2472_v27  ;;  %v2852_v11 = vpop.f32.mrf.mxu0  ;;  %v2916_v13 = vpop.f32.mrf.mxu1  ;;  %v2799_v27 = vadd.f32 %v4170_v30, %v4166_v42  ;;  %v4558_v42 = vld [vmem:[#allocation2_spill] sm:$0xff]  ;;  %v4560_v57 = vld [vmem:[#allocation9_spill] sm:$0xff] }
 0x27a   :  { %2399 = vst.msk [vmem:[%s4373_s7 + $0x30] sm:$0xff] %vm196_vm0, %v2355_v26  ;;  %v2420_v8 = vsel %vm196_vm0, %v2355_v26, 0.0  ;;  %v2454_v31 = vmul.f32 %v2355_v26, %v2355_v26  ;;  %v2261_v29 = vadd.f32 %v2851_v40, %v2164_v59  ;;  %v2738_v30 = vadd.f32 %v4558_v42, %v4557_v44  ;;  %v4559_v59 = vld [vmem:[#allocation4_spill] sm:$0xff] }
 0x27b   :  { %v2421_v33 = vadd.f32 %v2420_v8, %v2419_v47  ;;  %v2853_v43 = vpop.f32.mrf.mxu0  ;;  %v2917_v5 = vpop.f32.mrf.mxu1  ;;  %v2802_v26 = vadd.f32 %v4560_v57, %v4559_v59  ;;  %v4571_v59 = vld [vmem:[#allocation18_spill] sm:$0xff] }
 0x27c   :  { %v2475_v46 = vsel %vm196_vm0, %v2454_v31, 0.0  ;;  %v2358_v52 = vadd.f32 %v2915_v6, %v2261_v29  ;;  %v2854_v58 = vadd.f32 %v2853_v43, %v2852_v11  ;;  %v2918_v14 = vadd.f32 %v2917_v5, %v2916_v13 }
 0x27d   :  { %v2476_v53 = vadd.f32 %v2475_v46, %v2474_v10  ;;  %v2855_v60 = vpop.f32.mrf.mxu0  ;;  %v2919_v23 = vpop.f32.mrf.mxu1  ;;  %v2180_v10 = vadd.f32 %v2799_v27, %v2735_v3  ;;  %v2185_v46 = vadd.f32 %v2802_v26, %v2738_v30  ;;  %v2811_v57 = vadd.f32 %v4204_v9, %v4571_v59 }
 0x27e   :  { %2400 = vst.msk [vmem:[%s4373_s7 + $0x38] sm:$0xff] %vm196_vm0, %v2358_v52  ;;  %v2422_v63 = vsel %vm196_vm0, %v2358_v52, 0.0  ;;  %v2455_v37 = vmul.f32 %v2358_v52, %v2358_v52  ;;  %v2266_v20 = vadd.f32 %v2854_v58, %v2169_v16  ;;  %v4561_v52 = vld [vmem:[#allocation7_spill] sm:$0xff] }
 0x27f   :  { %v2423_v32 = vadd.f32 %v2422_v63, %v2421_v33  ;;  %v2856_v45 = vpop.f32.mrf.mxu0  ;;  %v2920_v4 = vpop.f32.mrf.mxu1  ;;  %v4562_v58 = vld [vmem:[#allocation11_spill] sm:$0xff]  ;;  %v4563_v63 = vld [vmem:[#allocation10_spill] sm:$0xff] }
 0x280   :  { %v2477_v19 = vsel %vm196_vm0, %v2455_v37, 0.0  ;;  %v2363_v48 = vadd.f32 %v2918_v14, %v2266_v20  ;;  %v2857_v12 = vadd.f32 %v2856_v45, %v2855_v60  ;;  %v2921_v28 = vadd.f32 %v2920_v4, %v2919_v23  ;;  %v4564_v37 = vld [vmem:[#allocation5_spill] sm:$0xff] }
 0x281   :  { %v2478_v49 = vadd.f32 %v2477_v19, %v2476_v53  ;;  %v2858_v50 = vpop.f32.mrf.mxu0  ;;  %v2922_v7 = vpop.f32.mrf.mxu1  ;;  %v2741_v5 = vadd.f32 %v4562_v58, %v4561_v52  ;;  %v2805_v20 = vadd.f32 %v4564_v37, %v4563_v63 }
 0x282   :  { %2401 = vst.msk [vmem:[%s4373_s7 + $0x40] sm:$0xff] %vm196_vm0, %v2363_v48  ;;  %v2424_v22 = vsel %vm196_vm0, %v2363_v48, 0.0  ;;  %v2456_v36 = vmul.f32 %v2363_v48, %v2363_v48  ;;  %v2269_v54 = vadd.f32 %v2857_v12, %v2172_v25 }
 0x283   :  { %v2425_v17 = vadd.f32 %v2424_v22, %v2423_v32  ;;  %v2859_v21 = vpop.f32.mrf.mxu0  ;;  %v2923_v0 = vpop.f32.mrf.mxu1  ;;  %v2188_v3 = vadd.f32 %v2805_v20, %v2741_v5 }
 0x284   :  { %v2479_v35 = vsel %vm196_vm0, %v2456_v36, 0.0  ;;  %v2366_v2 = vadd.f32 %v2921_v28, %v2269_v54  ;;  %v2860_v55 = vadd.f32 %v2859_v21, %v2858_v50  ;;  %v2924_v1 = vadd.f32 %v2923_v0, %v2922_v7  ;;  %v4566_v50 = vld [vmem:[#allocation6_spill] sm:$0xff]  ;;  %v4567_v36 = vld [vmem:[#allocation12_spill] sm:$0xff]  ;;  %v4568_v54 = vld [vmem:[#allocation17_spill] sm:$0xff] }
 0x285   :  { %v2480_v51 = vadd.f32 %v2479_v35, %v2478_v49  ;;  %v2861_v61 = vpop.f32.mrf.mxu0  ;;  %v2925_v47 = vpop.f32.mrf.mxu1  ;;  %v4565_v49 = vld [vmem:[#allocation8_spill] sm:$0xff]  ;;  %v2808_v28 = vadd.f32 %v4568_v54, %v4567_v36 }
 0x286   :  { %2402 = vst.msk [vmem:[%s4373_s7 + $0x48] sm:$0xff] %vm196_vm0, %v2366_v2  ;;  %v2426_v62 = vsel %vm196_vm0, %v2366_v2, 0.0  ;;  %v2457_v41 = vmul.f32 %v2366_v2, %v2366_v2  ;;  %v2274_v34 = vadd.f32 %v2860_v55, %v2177_v56  ;;  %v2744_v22 = vadd.f32 %v4566_v50, %v4565_v49 }
 0x287   :  { %v2427_v40 = vadd.f32 %v2426_v62, %v2425_v17  ;;  %v2862_v18 = vpop.f32.mrf.mxu0  ;;  %v2926_v29 = vpop.f32.mrf.mxu1 }
 0x288   :  { %v2481_v11 = vsel %vm196_vm0, %v2457_v41, 0.0  ;;  %v2371_v8 = vadd.f32 %v2924_v1, %v2274_v34  ;;  %v2863_v31 = vadd.f32 %v2862_v18, %v2861_v61  ;;  %v2927_v43 = vadd.f32 %v2926_v29, %v2925_v47  ;;  %v4569_v1 = vld [vmem:[#allocation15_spill] sm:$0xff] }
 0x289   :  { %v2482_v6 = vadd.f32 %v2481_v11, %v2480_v51  ;;  %v2864_v13 = vpop.f32.mrf.mxu0  ;;  %v2928_v24 = vpop.f32.mrf.mxu1  ;;  %v2193_v34 = vadd.f32 %v2808_v28, %v2744_v22  ;;  %v4570_v47 = vld [vmem:[#allocation19_spill] sm:$0xff] }
 0x28a   :  { %2403 = vst.msk [vmem:[%s4373_s7 + $0x50] sm:$0xff] %vm196_vm0, %v2371_v8  ;;  %v2428_v16 = vsel %vm196_vm0, %v2371_v8, 0.0  ;;  %v2458_v15 = vmul.f32 %v2371_v8, %v2371_v8  ;;  %v2277_v33 = vadd.f32 %v2863_v31, %v2180_v10  ;;  %v2747_v44 = vadd.f32 %v4570_v47, %v4569_v1 }
 0x28b   :  { %v2429_v53 = vadd.f32 %v2428_v16, %v2427_v40  ;;  %v2865_v60 = vpop.f32.mrf.mxu0  ;;  %v2929_v39 = vpop.f32.mrf.mxu1 }
 0x28c   :  { %v2483_v14 = vsel %vm196_vm0, %v2458_v15, 0.0  ;;  %v2374_v23 = vadd.f32 %v2927_v43, %v2277_v33  ;;  %v2866_v38 = vadd.f32 %v2865_v60, %v2864_v13  ;;  %v2930_v12 = vadd.f32 %v2929_v39, %v2928_v24 }
 0x28d   :  { %v2484_v32 = vadd.f32 %v2483_v14, %v2482_v6  ;;  %v2867_v45 = vpop.f32.mrf.mxu0  ;;  %v2931_v4 = vpop.f32.mrf.mxu1  ;;  %v2196_v33 = vadd.f32 %v2811_v57, %v2747_v44 }
 0x28e   :  { %2404 = vst.msk [vmem:[%s4373_s7 + $0x58] sm:$0xff] %vm196_vm0, %v2374_v23  ;;  %v2430_v25 = vsel %vm196_vm0, %v2374_v23, 0.0  ;;  %v2459_v19 = vmul.f32 %v2374_v23, %v2374_v23  ;;  %v2282_v48 = vadd.f32 %v2866_v38, %v2185_v46 }
 0x28f   :  { %v2431_v7 = vadd.f32 %v2430_v25, %v2429_v53  ;;  %v2868_v56 = vpop.f32.mrf.mxu0  ;;  %v2932_v35 = vpop.f32.mrf.mxu1 }
 0x290   :  { %v2485_v17 = vsel %vm196_vm0, %v2459_v19, 0.0  ;;  %v2379_v21 = vadd.f32 %v2930_v12, %v2282_v48  ;;  %v2869_v27 = vadd.f32 %v2868_v56, %v2867_v45  ;;  %v2933_v62 = vadd.f32 %v2932_v35, %v2931_v4 }
 0x291   :  { %v2486_v2 = vadd.f32 %v2485_v17, %v2484_v32  ;;  %v2870_v55 = vpop.f32.mrf.mxu0  ;;  %v2934_v41 = vpop.f32.mrf.mxu1 }
 0x292   :  { %2405 = vst.msk [vmem:[%s4373_s7 + $0x60] sm:$0xff] %vm196_vm0, %v2379_v21  ;;  %v2432_v0 = vsel %vm196_vm0, %v2379_v21, 0.0  ;;  %v2460_v51 = vmul.f32 %v2379_v21, %v2379_v21  ;;  %v2285_v61 = vadd.f32 %v2869_v27, %v2188_v3 }
 0x293   :  { %v2433_v42 = vadd.f32 %v2432_v0, %v2431_v7  ;;  %v2871_v30 = vpop.f32.mrf.mxu0  ;;  %v2935_v10 = vpop.f32.mrf.mxu1 }
 0x294   :  { %v2487_v26 = vsel %vm196_vm0, %v2460_v51, 0.0  ;;  %v2382_v40 = vadd.f32 %v2933_v62, %v2285_v61  ;;  %v2872_v18 = vadd.f32 %v2871_v30, %v2870_v55  ;;  %v2936_v13 = vadd.f32 %v2935_v10, %v2934_v41 }
 0x295   :  { %v2488_v11 = vadd.f32 %v2487_v26, %v2486_v2  ;;  %v2873_v8 = vpop.f32.mrf.mxu0  ;;  %v2937_v16 = vpop.f32.mrf.mxu1 }
 0x296   :  { %2406 = vst.msk [vmem:[%s4373_s7 + $0x68] sm:$0xff] %vm196_vm0, %v2382_v40  ;;  %v2434_v31 = vsel %vm196_vm0, %v2382_v40, 0.0  ;;  %v2461_v29 = vmul.f32 %v2382_v40, %v2382_v40  ;;  %v2290_v6 = vadd.f32 %v2872_v18, %v2193_v34 }
 0x297   :  { %v2435_v15 = vadd.f32 %v2434_v31, %v2433_v42  ;;  %v2874_v9 = vpop.f32.mrf.mxu0  ;;  %v2938_v52 = vpop.f32.mrf.mxu1 }
 0x298   :  { %v2489_v43 = vsel %vm196_vm0, %v2461_v29, 0.0  ;;  %v2387_v24 = vadd.f32 %v2936_v13, %v2290_v6  ;;  %v2875_v46 = vadd.f32 %v2874_v9, %v2873_v8  ;;  %v2939_v63 = vadd.f32 %v2938_v52, %v2937_v16 }
 0x299   :  { %v2490_v58 = vadd.f32 %v2489_v43, %v2488_v11 }
 0x29a   :  { %2407 = vst.msk [vmem:[%s4373_s7 + $0x70] sm:$0xff] %vm196_vm0, %v2387_v24  ;;  %v2436_v5 = vsel %vm196_vm0, %v2387_v24, 0.0  ;;  %v2462_v53 = vmul.f32 %v2387_v24, %v2387_v24  ;;  %v2293_v60 = vadd.f32 %v2875_v46, %v2196_v33 }
 0x29b   :  { %v2437_v37 = vadd.f32 %v2436_v5, %v2435_v15 }
 0x29c   :  { %v2491_v20 = vsel %vm196_vm0, %v2462_v53, 0.0  ;;  %v2390_v14 = vadd.f32 %v2939_v63, %v2293_v60 }
 0x29d   :  { %v2492_v23 = vadd.f32 %v2491_v20, %v2490_v58 }
 0x29e   :  { %2408 = vst.msk [vmem:[%s4373_s7 + $0x78] sm:$0xff] %vm196_vm0, %v2390_v14  ;;  %v2438_v38 = vsel %vm196_vm0, %v2390_v14, 0.0  ;;  %v2463_v39 = vmul.f32 %v2390_v14, %v2390_v14 }
 0x29f   :  { %v2439_v32 = vadd.f32 %v2438_v38, %v2437_v37 }
 0x2a0   :  { %v2493_v45 = vsel %vm196_vm0, %v2463_v39, 0.0 }
 0x2a1   :  { %v2440_v25 = vrot.slane %v2439_v32, 4  ;;  %v2494_v19 = vadd.f32 %v2493_v45, %v2492_v23 }
 0x2a3   :  { %v2441_v48 = vadd.f32 %v2440_v25, %v2439_v32  ;;  %v2495_v12 = vrot.slane %v2494_v19, 4 }
 0x2a5   :  { %v2442_v4 = vrot.slane %v2441_v48, 2  ;;  %v2496_v49 = vadd.f32 %v2495_v12, %v2494_v19 }
 0x2a7   :  { %v2443_v50 = vadd.f32 %v2442_v4, %v2441_v48  ;;  %v2497_v22 = vrot.slane %v2496_v49, 2 }
 0x2a9   :  { %v2444_v36 = vrot.slane %v2443_v50, 1  ;;  %v2498_v54 = vadd.f32 %v2497_v22, %v2496_v49 }
 0x2ab   :  { %v2445_v28 = vadd.f32 %v2444_v36, %v2443_v50  ;;  %v2499_v7 = vrot.slane %v2498_v54, 1 }
 0x2ad   :  { %2447 = vst.msk [vmem:[%s4374_s8] sm:$0x1] %vm2446_vm1, %v2445_v28  ;;  %v2500_v56 = vadd.f32 %v2499_v7, %v2498_v54 }
 0x2af   :  { %2501 = vst.msk [vmem:[%s4375_s9] sm:$0x1] %vm2446_vm1, %v2500_v56 }

</bundles_post_ra>
